<compile_context>
chip_gen: v6e
topology: v6e:2x2x1
jax: 0.10.0
libtpu: 0.0.40
codegen_flags: <defaults>
</compile_context>

<pallas_src>
import functools

import jax
import jax.numpy as jnp
from jax.experimental import pallas as pl
from jax.experimental.pallas import tpu as pltpu


# ----------------------------- Pallas kernel ------------------------------ #

def _cnn_fused_kernel(p_ref, wc_ref, bc_ref, w3_ref, b2_ref, o_ref, *,
                      tn, p_pad):
    """Fused conv(as matmul) + ReLU + linear for a chunk of `tn` samples.

    p_ref  : (CKK, tn*p_pad)      bf16 im2col patches, batch on the lane axis
    wc_ref : (hidden, CKK)        bf16 conv weight (flattened OIHW)
    bc_ref : (hidden, 1)          f32 conv bias (broadcasts over lanes)
    w3_ref : (nc, hidden, p_pad)  f32 linear weight, zero-padded along P
    b2_ref : (1, nc)              f32 linear bias
    o_ref  : (tn, nc)             f32 class scores for this chunk
    """
    hidden = wc_ref.shape[0]
    nc = b2_ref.shape[1]

    # Conv for all tn samples at once: one lane-dense MXU matmul with f32
    # accumulation, fused bias + ReLU.  Padded lanes hold relu(bias); they are
    # killed below by the zero-padded w3 columns.
    acc = jnp.dot(wc_ref[...], p_ref[...],
                  preferred_element_type=jnp.float32)          # (hidden, tn*p_pad)
    act = jnp.maximum(acc + bc_ref[...], 0.0)                  # f32

    # Linear layer: per-class contiguous (hidden, p_pad) slices, fully
    # unrolled (nc=10).  Peak live state ~24 vregs -> no spills, no
    # (hidden, nc, P) broadcast intermediate.
    lane_k = jax.lax.broadcasted_iota(jnp.int32, (hidden, nc), 1)  # hoisted
    rows = []
    for n in range(tn):
        a_n = act[:, n * p_pad:(n + 1) * p_pad]                # aligned lane slice
        cmat = jnp.zeros((hidden, nc), jnp.float32)
        for k in range(nc):
            col = jnp.sum(w3_ref[k] * a_n, axis=1, keepdims=True)  # (hidden, 1)
            cmat = cmat + jnp.where(lane_k == k, col, 0.0)
        rows.append(jnp.sum(cmat, axis=0, keepdims=True))      # (1, nc)
    scores = jnp.concatenate(rows, axis=0) + b2_ref[...]       # (tn, nc)
    o_ref[...] = scores.astype(o_ref.dtype)


def cnn_fused_pallas(patches_flat, wc, bc, w3, b2, *, tn, p_pad):
    ckk, lanes = patches_flat.shape
    n_tot = lanes // p_pad
    hidden = wc.shape[0]
    nc = b2.shape[1]

    flops = 2 * hidden * n_tot * p_pad * (ckk + nc)
    bytes_accessed = (2 * (patches_flat.size + wc.size)
                      + 4 * (bc.size + w3.size + b2.size + n_tot * nc))

    return pl.pallas_call(
        functools.partial(_cnn_fused_kernel, tn=tn, p_pad=p_pad),
        out_shape=jax.ShapeDtypeStruct((n_tot, nc), jnp.float32),
        grid=(n_tot // tn,),
        in_specs=[
            pl.BlockSpec((ckk, tn * p_pad), lambda g: (0, g)),
            # Grid-invariant operands (never re-fetched at grid=(1,)).
            # TODO(synk): pipeline_mode=pl.Buffered(1) on these once larger
            # shapes make the duplicate double-buffer VMEM matter.
            pl.BlockSpec((hidden, ckk), lambda g: (0, 0)),
            pl.BlockSpec((hidden, 1), lambda g: (0, 0)),
            pl.BlockSpec((nc, hidden, p_pad), lambda g: (0, 0, 0)),
            pl.BlockSpec((1, nc), lambda g: (0, 0)),
        ],
        out_specs=pl.BlockSpec((tn, nc), lambda g: (g, 0)),
        compiler_params=pltpu.CompilerParams(
            dimension_semantics=("parallel",),
            vmem_limit_bytes=32 * 1024 * 1024),
        cost_estimate=pl.CostEstimate(flops=flops, transcendentals=0,
                                      bytes_accessed=bytes_accessed),
    )(patches_flat, wc, bc, w3, b2)


# ------------------------------ JAX glue ---------------------------------- #

def _im2col(x, K):
    """x: (N, C, H, W) -> patches: (N, C*K*K, OH*OW), valid conv, stride 1."""
    N, C, H, W = x.shape
    OH, OW = H - K + 1, W - K + 1
    cols = [x[:, :, i:i + OH, j:j + OW] for i in range(K) for j in range(K)]
    pt = jnp.stack(cols, axis=2)                   # (N, C, K*K, OH, OW)
    return pt.reshape(N, C * K * K, OH * OW), OH, OW


@functools.partial(jax.jit, static_argnames=("kernel_size",))
def cnn_forward(images, conv_w, conv_b, lin_w, lin_b, *, kernel_size):
    """Forward pass equivalent to the PyTorch CNN module.

    images : (N, C, H, W) f32
    conv_w : (hidden, C, K, K), conv_b : (hidden,)
    lin_w  : (n_classes, hidden*OH*OW), lin_b : (n_classes,)
    returns: (N, n_classes) f32
    """
    N, C, H, W = images.shape
    hidden = conv_w.shape[0]
    n_classes = lin_w.shape[0]
    K = kernel_size

    patches, OH, OW = _im2col(images, K)           # (N, CKK, P)
    CKK = C * K * K
    P = OH * OW
    P_pad = ((P + 127) // 128) * 128               # lane-pad per sample: 196 -> 256

    # Batch chunking: up to 8 samples per grid step (all of them when N <= 8).
    TN = N if N <= 8 else 8
    N_tot = ((N + TN - 1) // TN) * TN

    # Zero-pad P (and the batch if needed); put (sample, spatial) on the lane
    # axis: (CKK, N_tot*P_pad).  bf16 MXU operands, f32 accumulation in-kernel.
    patches = jnp.pad(patches, ((0, N_tot - N), (0, 0), (0, P_pad - P)))
    patches_flat = (patches.transpose(1, 0, 2)
                    .reshape(CKK, N_tot * P_pad)
                    .astype(jnp.bfloat16))

    wc = conv_w.reshape(hidden, CKK).astype(jnp.bfloat16)
    bc = conv_b.reshape(hidden, 1)
    # Linear weight with nc leading (nc never lands on sublanes) and the
    # PyTorch (N, hidden, OH, OW) -> (N, hidden*OH*OW) flatten folded in;
    # zero-padded along P so padded act lanes (= relu(conv_bias)) cancel.
    # TODO(synk): cast w3 to bf16 on v6e/v7x; kept f32 so the VPU-side
    # elementwise path stays native on v5e.
    w3 = jnp.pad(lin_w.reshape(n_classes, hidden, P),
                 ((0, 0), (0, 0), (0, P_pad - P)))
    b2 = lin_b.reshape(1, n_classes)

    out = cnn_fused_pallas(patches_flat, wc, bc, w3, b2, tn=TN, p_pad=P_pad)
    return out[:N]


# ------------------------------ main -------------------------------------- #

if __name__ == "__main__":
    # Module hyper-parameters (small shapes).
    im_size = (4, 16, 16)        # (channels, height, width)
    hidden_dim = 32
    kernel_size = 3
    n_classes = 10
    batch = 2

    C, H, W = im_size
    OH = OW = H - kernel_size + 1
    feat = hidden_dim * OH * OW

    key = jax.random.PRNGKey(0)
    k_img, k_cw, k_cb, k_lw, k_lb = jax.random.split(key, 5)

    # Deterministic parameter init (PyTorch-default-like uniform scales).
    conv_fan_in = C * kernel_size * kernel_size
    conv_bound = 1.0 / float(conv_fan_in) ** 0.5
    conv_w = jax.random.uniform(
        k_cw, (hidden_dim, C, kernel_size, kernel_size),
        minval=-conv_bound, maxval=conv_bound, dtype=jnp.float32)
    conv_b = jax.random.uniform(
        k_cb, (hidden_dim,), minval=-conv_bound, maxval=conv_bound,
        dtype=jnp.float32)

    lin_bound = 1.0 / float(feat) ** 0.5
    lin_w = jax.random.uniform(
        k_lw, (n_classes, feat), minval=-lin_bound, maxval=lin_bound,
        dtype=jnp.float32)
    lin_b = jax.random.uniform(
        k_lb, (n_classes,), minval=-lin_bound, maxval=lin_bound,
        dtype=jnp.float32)

    images = jax.random.normal(k_img, (batch, C, H, W), dtype=jnp.float32)

    scores = cnn_forward(images, conv_w, conv_b, lin_w, lin_b,
                         kernel_size=kernel_size)
    scores = jax.block_until_ready(scores)

    # Pure-JAX f32 reference for a correctness check.
    ref_conv = jax.lax.conv_general_dilated(
        images, conv_w, window_strides=(1, 1), padding="VALID",
        dimension_numbers=("NCHW", "OIHW", "NCHW"))
    ref_act = jnp.maximum(ref_conv + conv_b[None, :, None, None], 0.0)
    ref = ref_act.reshape(batch, -1) @ lin_w.T + lin_b

    assert scores.shape == (batch, n_classes)
    # Tolerance widened vs the f32 reference because the conv operands
    # (patches, conv weight) run through the MXU in bf16 (f32 accumulation);
    # genuine layout/permutation bugs would show up as O(0.1)+ differences
    # and still trip this check.
    assert jnp.allclose(scores, ref, atol=2e-2, rtol=2e-2), (
        "mismatch vs reference: max abs diff "
        f"{float(jnp.max(jnp.abs(scores - ref)))}")

    print("KERNEL_OK")
</pallas_src>

<mosaic_0001>
module attributes {stable_mosaic.version = 11 : i64} {
  func.func @_cnn_fused_kernel(%arg0: i32, %arg1: memref<36x512xbf16, #tpu.memory_space<vmem>>, %arg2: memref<32x36xbf16, #tpu.memory_space<vmem>>, %arg3: memref<32x1xf32, #tpu.memory_space<vmem>>, %arg4: memref<10x32x256xf32, #tpu.memory_space<vmem>>, %arg5: memref<1x10xf32, #tpu.memory_space<vmem>>, %arg6: memref<2x10xf32, #tpu.memory_space<vmem>>) attributes {dimension_semantics = [#tpu.dimension_semantics<parallel>], iteration_bounds = array<i64: 1>, scalar_prefetch = 0 : i64, scratch_operands = 0 : i64, tpu.core_type = #tpu.core_type<tc>, window_params = [{transform_indices = @transform_0, window_bounds = array<i64: 36, 512>}, {pipeline_mode = #tpu.pipeline_mode<synchronous>, transform_indices = @transform_1, window_bounds = array<i64: 32, 36>}, {pipeline_mode = #tpu.pipeline_mode<synchronous>, transform_indices = @transform_2, window_bounds = array<i64: 32, 1>}, {pipeline_mode = #tpu.pipeline_mode<synchronous>, transform_indices = @transform_3, window_bounds = array<i64: 10, 32, 256>}, {pipeline_mode = #tpu.pipeline_mode<synchronous>, transform_indices = @transform_4, window_bounds = array<i64: 1, 10>}, {transform_indices = @transform_5, window_bounds = array<i64: 2, 10>}]} {
    %c0 = arith.constant 0 : index
    %c0_0 = arith.constant 0 : index
    %0 = vector.load %arg2[%c0, %c0_0] : memref<32x36xbf16, #tpu.memory_space<vmem>>, vector<32x36xbf16>
    %c0_1 = arith.constant 0 : index
    %c0_2 = arith.constant 0 : index
    %1 = vector.load %arg1[%c0_1, %c0_2] : memref<36x512xbf16, #tpu.memory_space<vmem>>, vector<36x512xbf16>
    %cst = arith.constant dense<0.000000e+00> : vector<32x512xf32>
    %2 = tpu.matmul %0, %1, %cst {dimension_numbers = #tpu.dot_dimension_numbers<[1], [0], [0], [1], [0, 0, 1, 1], [], []>} : vector<32x36xbf16>, vector<36x512xbf16>, vector<32x512xf32> -> vector<32x512xf32>
    %c0_3 = arith.constant 0 : index
    %c0_4 = arith.constant 0 : index
    %3 = vector.load %arg3[%c0_3, %c0_4] : memref<32x1xf32, #tpu.memory_space<vmem>>, vector<32x1xf32>
    %4 = vector.broadcast %3 : vector<32x1xf32> to vector<32x512xf32>
    %5 = arith.addf %2, %4 : vector<32x512xf32>
    %cst_5 = arith.constant 0.000000e+00 : f32
    %6 = vector.broadcast %cst_5 : f32 to vector<32x512xf32>
    %7 = arith.maximumf %5, %6 : vector<32x512xf32>
    %8 = tpu.iota {dimensions = array<i32: 1>} : vector<32x10xi32>
    %9 = vector.extract_strided_slice %7 {offsets = [0, 0], sizes = [32, 256], strides = [1, 1]} : vector<32x512xf32> to vector<32x256xf32>
    %cst_6 = arith.constant 0.000000e+00 : f32
    %10 = vector.broadcast %cst_6 : f32 to vector<32x10xf32>
    %c0_7 = arith.constant 0 : index
    %c0_8 = arith.constant 0 : index
    %c0_9 = arith.constant 0 : index
    %11 = vector.load %arg4[%c0_7, %c0_8, %c0_9] : memref<10x32x256xf32, #tpu.memory_space<vmem>>, vector<1x32x256xf32>
    %12 = vector.shape_cast %11 : vector<1x32x256xf32> to vector<32x256xf32>
    %13 = arith.mulf %12, %9 : vector<32x256xf32>
    %cst_10 = arith.constant dense<0.000000e+00> : vector<32xf32>
    %14 = vector.multi_reduction <add>, %13, %cst_10 [1] : vector<32x256xf32> to vector<32xf32>
    %15 = vector.shape_cast %14 : vector<32xf32> to vector<32x1xf32>
    %c0_i32 = arith.constant 0 : i32
    %16 = vector.broadcast %c0_i32 : i32 to vector<32x10xi32>
    %17 = arith.cmpi eq, %8, %16 : vector<32x10xi32>
    %cst_11 = arith.constant 0.000000e+00 : f32
    %18 = vector.shape_cast %15 : vector<32x1xf32> to vector<32x1xf32>
    %19 = vector.broadcast %18 : vector<32x1xf32> to vector<32x10xf32>
    %20 = vector.broadcast %cst_11 : f32 to vector<32x10xf32>
    %21 = arith.select %17, %19, %20 : vector<32x10xi1>, vector<32x10xf32>
    %22 = arith.addf %10, %21 : vector<32x10xf32>
    %c1 = arith.constant 1 : index
    %c0_12 = arith.constant 0 : index
    %c0_13 = arith.constant 0 : index
    %23 = vector.load %arg4[%c1, %c0_12, %c0_13] : memref<10x32x256xf32, #tpu.memory_space<vmem>>, vector<1x32x256xf32>
    %24 = vector.shape_cast %23 : vector<1x32x256xf32> to vector<32x256xf32>
    %25 = arith.mulf %24, %9 : vector<32x256xf32>
    %cst_14 = arith.constant dense<0.000000e+00> : vector<32xf32>
    %26 = vector.multi_reduction <add>, %25, %cst_14 [1] : vector<32x256xf32> to vector<32xf32>
    %27 = vector.shape_cast %26 : vector<32xf32> to vector<32x1xf32>
    %c1_i32 = arith.constant 1 : i32
    %28 = vector.broadcast %c1_i32 : i32 to vector<32x10xi32>
    %29 = arith.cmpi eq, %8, %28 : vector<32x10xi32>
    %cst_15 = arith.constant 0.000000e+00 : f32
    %30 = vector.shape_cast %27 : vector<32x1xf32> to vector<32x1xf32>
    %31 = vector.broadcast %30 : vector<32x1xf32> to vector<32x10xf32>
    %32 = vector.broadcast %cst_15 : f32 to vector<32x10xf32>
    %33 = arith.select %29, %31, %32 : vector<32x10xi1>, vector<32x10xf32>
    %34 = arith.addf %22, %33 : vector<32x10xf32>
    %c2 = arith.constant 2 : index
    %c0_16 = arith.constant 0 : index
    %c0_17 = arith.constant 0 : index
    %35 = vector.load %arg4[%c2, %c0_16, %c0_17] : memref<10x32x256xf32, #tpu.memory_space<vmem>>, vector<1x32x256xf32>
    %36 = vector.shape_cast %35 : vector<1x32x256xf32> to vector<32x256xf32>
    %37 = arith.mulf %36, %9 : vector<32x256xf32>
    %cst_18 = arith.constant dense<0.000000e+00> : vector<32xf32>
    %38 = vector.multi_reduction <add>, %37, %cst_18 [1] : vector<32x256xf32> to vector<32xf32>
    %39 = vector.shape_cast %38 : vector<32xf32> to vector<32x1xf32>
    %c2_i32 = arith.constant 2 : i32
    %40 = vector.broadcast %c2_i32 : i32 to vector<32x10xi32>
    %41 = arith.cmpi eq, %8, %40 : vector<32x10xi32>
    %cst_19 = arith.constant 0.000000e+00 : f32
    %42 = vector.shape_cast %39 : vector<32x1xf32> to vector<32x1xf32>
    %43 = vector.broadcast %42 : vector<32x1xf32> to vector<32x10xf32>
    %44 = vector.broadcast %cst_19 : f32 to vector<32x10xf32>
    %45 = arith.select %41, %43, %44 : vector<32x10xi1>, vector<32x10xf32>
    %46 = arith.addf %34, %45 : vector<32x10xf32>
    %c3 = arith.constant 3 : index
    %c0_20 = arith.constant 0 : index
    %c0_21 = arith.constant 0 : index
    %47 = vector.load %arg4[%c3, %c0_20, %c0_21] : memref<10x32x256xf32, #tpu.memory_space<vmem>>, vector<1x32x256xf32>
    %48 = vector.shape_cast %47 : vector<1x32x256xf32> to vector<32x256xf32>
    %49 = arith.mulf %48, %9 : vector<32x256xf32>
    %cst_22 = arith.constant dense<0.000000e+00> : vector<32xf32>
    %50 = vector.multi_reduction <add>, %49, %cst_22 [1] : vector<32x256xf32> to vector<32xf32>
    %51 = vector.shape_cast %50 : vector<32xf32> to vector<32x1xf32>
    %c3_i32 = arith.constant 3 : i32
    %52 = vector.broadcast %c3_i32 : i32 to vector<32x10xi32>
    %53 = arith.cmpi eq, %8, %52 : vector<32x10xi32>
    %cst_23 = arith.constant 0.000000e+00 : f32
    %54 = vector.shape_cast %51 : vector<32x1xf32> to vector<32x1xf32>
    %55 = vector.broadcast %54 : vector<32x1xf32> to vector<32x10xf32>
    %56 = vector.broadcast %cst_23 : f32 to vector<32x10xf32>
    %57 = arith.select %53, %55, %56 : vector<32x10xi1>, vector<32x10xf32>
    %58 = arith.addf %46, %57 : vector<32x10xf32>
    %c4 = arith.constant 4 : index
    %c0_24 = arith.constant 0 : index
    %c0_25 = arith.constant 0 : index
    %59 = vector.load %arg4[%c4, %c0_24, %c0_25] : memref<10x32x256xf32, #tpu.memory_space<vmem>>, vector<1x32x256xf32>
    %60 = vector.shape_cast %59 : vector<1x32x256xf32> to vector<32x256xf32>
    %61 = arith.mulf %60, %9 : vector<32x256xf32>
    %cst_26 = arith.constant dense<0.000000e+00> : vector<32xf32>
    %62 = vector.multi_reduction <add>, %61, %cst_26 [1] : vector<32x256xf32> to vector<32xf32>
    %63 = vector.shape_cast %62 : vector<32xf32> to vector<32x1xf32>
    %c4_i32 = arith.constant 4 : i32
    %64 = vector.broadcast %c4_i32 : i32 to vector<32x10xi32>
    %65 = arith.cmpi eq, %8, %64 : vector<32x10xi32>
    %cst_27 = arith.constant 0.000000e+00 : f32
    %66 = vector.shape_cast %63 : vector<32x1xf32> to vector<32x1xf32>
    %67 = vector.broadcast %66 : vector<32x1xf32> to vector<32x10xf32>
    %68 = vector.broadcast %cst_27 : f32 to vector<32x10xf32>
    %69 = arith.select %65, %67, %68 : vector<32x10xi1>, vector<32x10xf32>
    %70 = arith.addf %58, %69 : vector<32x10xf32>
    %c5 = arith.constant 5 : index
    %c0_28 = arith.constant 0 : index
    %c0_29 = arith.constant 0 : index
    %71 = vector.load %arg4[%c5, %c0_28, %c0_29] : memref<10x32x256xf32, #tpu.memory_space<vmem>>, vector<1x32x256xf32>
    %72 = vector.shape_cast %71 : vector<1x32x256xf32> to vector<32x256xf32>
    %73 = arith.mulf %72, %9 : vector<32x256xf32>
    %cst_30 = arith.constant dense<0.000000e+00> : vector<32xf32>
    %74 = vector.multi_reduction <add>, %73, %cst_30 [1] : vector<32x256xf32> to vector<32xf32>
    %75 = vector.shape_cast %74 : vector<32xf32> to vector<32x1xf32>
    %c5_i32 = arith.constant 5 : i32
    %76 = vector.broadcast %c5_i32 : i32 to vector<32x10xi32>
    %77 = arith.cmpi eq, %8, %76 : vector<32x10xi32>
    %cst_31 = arith.constant 0.000000e+00 : f32
    %78 = vector.shape_cast %75 : vector<32x1xf32> to vector<32x1xf32>
    %79 = vector.broadcast %78 : vector<32x1xf32> to vector<32x10xf32>
    %80 = vector.broadcast %cst_31 : f32 to vector<32x10xf32>
    %81 = arith.select %77, %79, %80 : vector<32x10xi1>, vector<32x10xf32>
    %82 = arith.addf %70, %81 : vector<32x10xf32>
    %c6 = arith.constant 6 : index
    %c0_32 = arith.constant 0 : index
    %c0_33 = arith.constant 0 : index
    %83 = vector.load %arg4[%c6, %c0_32, %c0_33] : memref<10x32x256xf32, #tpu.memory_space<vmem>>, vector<1x32x256xf32>
    %84 = vector.shape_cast %83 : vector<1x32x256xf32> to vector<32x256xf32>
    %85 = arith.mulf %84, %9 : vector<32x256xf32>
    %cst_34 = arith.constant dense<0.000000e+00> : vector<32xf32>
    %86 = vector.multi_reduction <add>, %85, %cst_34 [1] : vector<32x256xf32> to vector<32xf32>
    %87 = vector.shape_cast %86 : vector<32xf32> to vector<32x1xf32>
    %c6_i32 = arith.constant 6 : i32
    %88 = vector.broadcast %c6_i32 : i32 to vector<32x10xi32>
    %89 = arith.cmpi eq, %8, %88 : vector<32x10xi32>
    %cst_35 = arith.constant 0.000000e+00 : f32
    %90 = vector.shape_cast %87 : vector<32x1xf32> to vector<32x1xf32>
    %91 = vector.broadcast %90 : vector<32x1xf32> to vector<32x10xf32>
    %92 = vector.broadcast %cst_35 : f32 to vector<32x10xf32>
    %93 = arith.select %89, %91, %92 : vector<32x10xi1>, vector<32x10xf32>
    %94 = arith.addf %82, %93 : vector<32x10xf32>
    %c7 = arith.constant 7 : index
    %c0_36 = arith.constant 0 : index
    %c0_37 = arith.constant 0 : index
    %95 = vector.load %arg4[%c7, %c0_36, %c0_37] : memref<10x32x256xf32, #tpu.memory_space<vmem>>, vector<1x32x256xf32>
    %96 = vector.shape_cast %95 : vector<1x32x256xf32> to vector<32x256xf32>
    %97 = arith.mulf %96, %9 : vector<32x256xf32>
    %cst_38 = arith.constant dense<0.000000e+00> : vector<32xf32>
    %98 = vector.multi_reduction <add>, %97, %cst_38 [1] : vector<32x256xf32> to vector<32xf32>
    %99 = vector.shape_cast %98 : vector<32xf32> to vector<32x1xf32>
    %c7_i32 = arith.constant 7 : i32
    %100 = vector.broadcast %c7_i32 : i32 to vector<32x10xi32>
    %101 = arith.cmpi eq, %8, %100 : vector<32x10xi32>
    %cst_39 = arith.constant 0.000000e+00 : f32
    %102 = vector.shape_cast %99 : vector<32x1xf32> to vector<32x1xf32>
    %103 = vector.broadcast %102 : vector<32x1xf32> to vector<32x10xf32>
    %104 = vector.broadcast %cst_39 : f32 to vector<32x10xf32>
    %105 = arith.select %101, %103, %104 : vector<32x10xi1>, vector<32x10xf32>
    %106 = arith.addf %94, %105 : vector<32x10xf32>
    %c8 = arith.constant 8 : index
    %c0_40 = arith.constant 0 : index
    %c0_41 = arith.constant 0 : index
    %107 = vector.load %arg4[%c8, %c0_40, %c0_41] : memref<10x32x256xf32, #tpu.memory_space<vmem>>, vector<1x32x256xf32>
    %108 = vector.shape_cast %107 : vector<1x32x256xf32> to vector<32x256xf32>
    %109 = arith.mulf %108, %9 : vector<32x256xf32>
    %cst_42 = arith.constant dense<0.000000e+00> : vector<32xf32>
    %110 = vector.multi_reduction <add>, %109, %cst_42 [1] : vector<32x256xf32> to vector<32xf32>
    %111 = vector.shape_cast %110 : vector<32xf32> to vector<32x1xf32>
    %c8_i32 = arith.constant 8 : i32
    %112 = vector.broadcast %c8_i32 : i32 to vector<32x10xi32>
    %113 = arith.cmpi eq, %8, %112 : vector<32x10xi32>
    %cst_43 = arith.constant 0.000000e+00 : f32
    %114 = vector.shape_cast %111 : vector<32x1xf32> to vector<32x1xf32>
    %115 = vector.broadcast %114 : vector<32x1xf32> to vector<32x10xf32>
    %116 = vector.broadcast %cst_43 : f32 to vector<32x10xf32>
    %117 = arith.select %113, %115, %116 : vector<32x10xi1>, vector<32x10xf32>
    %118 = arith.addf %106, %117 : vector<32x10xf32>
    %c9 = arith.constant 9 : index
    %c0_44 = arith.constant 0 : index
    %c0_45 = arith.constant 0 : index
    %119 = vector.load %arg4[%c9, %c0_44, %c0_45] : memref<10x32x256xf32, #tpu.memory_space<vmem>>, vector<1x32x256xf32>
    %120 = vector.shape_cast %119 : vector<1x32x256xf32> to vector<32x256xf32>
    %121 = arith.mulf %120, %9 : vector<32x256xf32>
    %cst_46 = arith.constant dense<0.000000e+00> : vector<32xf32>
    %122 = vector.multi_reduction <add>, %121, %cst_46 [1] : vector<32x256xf32> to vector<32xf32>
    %123 = vector.shape_cast %122 : vector<32xf32> to vector<32x1xf32>
    %c9_i32 = arith.constant 9 : i32
    %124 = vector.broadcast %c9_i32 : i32 to vector<32x10xi32>
    %125 = arith.cmpi eq, %8, %124 : vector<32x10xi32>
    %cst_47 = arith.constant 0.000000e+00 : f32
    %126 = vector.shape_cast %123 : vector<32x1xf32> to vector<32x1xf32>
    %127 = vector.broadcast %126 : vector<32x1xf32> to vector<32x10xf32>
    %128 = vector.broadcast %cst_47 : f32 to vector<32x10xf32>
    %129 = arith.select %125, %127, %128 : vector<32x10xi1>, vector<32x10xf32>
    %130 = arith.addf %118, %129 : vector<32x10xf32>
    %cst_48 = arith.constant dense<0.000000e+00> : vector<10xf32>
    %131 = vector.multi_reduction <add>, %130, %cst_48 [0] : vector<32x10xf32> to vector<10xf32>
    %132 = vector.shape_cast %131 : vector<10xf32> to vector<1x10xf32>
    %133 = vector.extract_strided_slice %7 {offsets = [0, 256], sizes = [32, 256], strides = [1, 1]} : vector<32x512xf32> to vector<32x256xf32>
    %cst_49 = arith.constant 0.000000e+00 : f32
    %134 = vector.broadcast %cst_49 : f32 to vector<32x10xf32>
    %c0_50 = arith.constant 0 : index
    %c0_51 = arith.constant 0 : index
    %c0_52 = arith.constant 0 : index
    %135 = vector.load %arg4[%c0_50, %c0_51, %c0_52] : memref<10x32x256xf32, #tpu.memory_space<vmem>>, vector<1x32x256xf32>
    %136 = vector.shape_cast %135 : vector<1x32x256xf32> to vector<32x256xf32>
    %137 = arith.mulf %136, %133 : vector<32x256xf32>
    %cst_53 = arith.constant dense<0.000000e+00> : vector<32xf32>
    %138 = vector.multi_reduction <add>, %137, %cst_53 [1] : vector<32x256xf32> to vector<32xf32>
    %139 = vector.shape_cast %138 : vector<32xf32> to vector<32x1xf32>
    %c0_i32_54 = arith.constant 0 : i32
    %140 = vector.broadcast %c0_i32_54 : i32 to vector<32x10xi32>
    %141 = arith.cmpi eq, %8, %140 : vector<32x10xi32>
    %cst_55 = arith.constant 0.000000e+00 : f32
    %142 = vector.shape_cast %139 : vector<32x1xf32> to vector<32x1xf32>
    %143 = vector.broadcast %142 : vector<32x1xf32> to vector<32x10xf32>
    %144 = vector.broadcast %cst_55 : f32 to vector<32x10xf32>
    %145 = arith.select %141, %143, %144 : vector<32x10xi1>, vector<32x10xf32>
    %146 = arith.addf %134, %145 : vector<32x10xf32>
    %c1_56 = arith.constant 1 : index
    %c0_57 = arith.constant 0 : index
    %c0_58 = arith.constant 0 : index
    %147 = vector.load %arg4[%c1_56, %c0_57, %c0_58] : memref<10x32x256xf32, #tpu.memory_space<vmem>>, vector<1x32x256xf32>
    %148 = vector.shape_cast %147 : vector<1x32x256xf32> to vector<32x256xf32>
    %149 = arith.mulf %148, %133 : vector<32x256xf32>
    %cst_59 = arith.constant dense<0.000000e+00> : vector<32xf32>
    %150 = vector.multi_reduction <add>, %149, %cst_59 [1] : vector<32x256xf32> to vector<32xf32>
    %151 = vector.shape_cast %150 : vector<32xf32> to vector<32x1xf32>
    %c1_i32_60 = arith.constant 1 : i32
    %152 = vector.broadcast %c1_i32_60 : i32 to vector<32x10xi32>
    %153 = arith.cmpi eq, %8, %152 : vector<32x10xi32>
    %cst_61 = arith.constant 0.000000e+00 : f32
    %154 = vector.shape_cast %151 : vector<32x1xf32> to vector<32x1xf32>
    %155 = vector.broadcast %154 : vector<32x1xf32> to vector<32x10xf32>
    %156 = vector.broadcast %cst_61 : f32 to vector<32x10xf32>
    %157 = arith.select %153, %155, %156 : vector<32x10xi1>, vector<32x10xf32>
    %158 = arith.addf %146, %157 : vector<32x10xf32>
    %c2_62 = arith.constant 2 : index
    %c0_63 = arith.constant 0 : index
    %c0_64 = arith.constant 0 : index
    %159 = vector.load %arg4[%c2_62, %c0_63, %c0_64] : memref<10x32x256xf32, #tpu.memory_space<vmem>>, vector<1x32x256xf32>
    %160 = vector.shape_cast %159 : vector<1x32x256xf32> to vector<32x256xf32>
    %161 = arith.mulf %160, %133 : vector<32x256xf32>
    %cst_65 = arith.constant dense<0.000000e+00> : vector<32xf32>
    %162 = vector.multi_reduction <add>, %161, %cst_65 [1] : vector<32x256xf32> to vector<32xf32>
    %163 = vector.shape_cast %162 : vector<32xf32> to vector<32x1xf32>
    %c2_i32_66 = arith.constant 2 : i32
    %164 = vector.broadcast %c2_i32_66 : i32 to vector<32x10xi32>
    %165 = arith.cmpi eq, %8, %164 : vector<32x10xi32>
    %cst_67 = arith.constant 0.000000e+00 : f32
    %166 = vector.shape_cast %163 : vector<32x1xf32> to vector<32x1xf32>
    %167 = vector.broadcast %166 : vector<32x1xf32> to vector<32x10xf32>
    %168 = vector.broadcast %cst_67 : f32 to vector<32x10xf32>
    %169 = arith.select %165, %167, %168 : vector<32x10xi1>, vector<32x10xf32>
    %170 = arith.addf %158, %169 : vector<32x10xf32>
    %c3_68 = arith.constant 3 : index
    %c0_69 = arith.constant 0 : index
    %c0_70 = arith.constant 0 : index
    %171 = vector.load %arg4[%c3_68, %c0_69, %c0_70] : memref<10x32x256xf32, #tpu.memory_space<vmem>>, vector<1x32x256xf32>
    %172 = vector.shape_cast %171 : vector<1x32x256xf32> to vector<32x256xf32>
    %173 = arith.mulf %172, %133 : vector<32x256xf32>
    %cst_71 = arith.constant dense<0.000000e+00> : vector<32xf32>
    %174 = vector.multi_reduction <add>, %173, %cst_71 [1] : vector<32x256xf32> to vector<32xf32>
    %175 = vector.shape_cast %174 : vector<32xf32> to vector<32x1xf32>
    %c3_i32_72 = arith.constant 3 : i32
    %176 = vector.broadcast %c3_i32_72 : i32 to vector<32x10xi32>
    %177 = arith.cmpi eq, %8, %176 : vector<32x10xi32>
    %cst_73 = arith.constant 0.000000e+00 : f32
    %178 = vector.shape_cast %175 : vector<32x1xf32> to vector<32x1xf32>
    %179 = vector.broadcast %178 : vector<32x1xf32> to vector<32x10xf32>
    %180 = vector.broadcast %cst_73 : f32 to vector<32x10xf32>
    %181 = arith.select %177, %179, %180 : vector<32x10xi1>, vector<32x10xf32>
    %182 = arith.addf %170, %181 : vector<32x10xf32>
    %c4_74 = arith.constant 4 : index
    %c0_75 = arith.constant 0 : index
    %c0_76 = arith.constant 0 : index
    %183 = vector.load %arg4[%c4_74, %c0_75, %c0_76] : memref<10x32x256xf32, #tpu.memory_space<vmem>>, vector<1x32x256xf32>
    %184 = vector.shape_cast %183 : vector<1x32x256xf32> to vector<32x256xf32>
    %185 = arith.mulf %184, %133 : vector<32x256xf32>
    %cst_77 = arith.constant dense<0.000000e+00> : vector<32xf32>
    %186 = vector.multi_reduction <add>, %185, %cst_77 [1] : vector<32x256xf32> to vector<32xf32>
    %187 = vector.shape_cast %186 : vector<32xf32> to vector<32x1xf32>
    %c4_i32_78 = arith.constant 4 : i32
    %188 = vector.broadcast %c4_i32_78 : i32 to vector<32x10xi32>
    %189 = arith.cmpi eq, %8, %188 : vector<32x10xi32>
    %cst_79 = arith.constant 0.000000e+00 : f32
    %190 = vector.shape_cast %187 : vector<32x1xf32> to vector<32x1xf32>
    %191 = vector.broadcast %190 : vector<32x1xf32> to vector<32x10xf32>
    %192 = vector.broadcast %cst_79 : f32 to vector<32x10xf32>
    %193 = arith.select %189, %191, %192 : vector<32x10xi1>, vector<32x10xf32>
    %194 = arith.addf %182, %193 : vector<32x10xf32>
    %c5_80 = arith.constant 5 : index
    %c0_81 = arith.constant 0 : index
    %c0_82 = arith.constant 0 : index
    %195 = vector.load %arg4[%c5_80, %c0_81, %c0_82] : memref<10x32x256xf32, #tpu.memory_space<vmem>>, vector<1x32x256xf32>
    %196 = vector.shape_cast %195 : vector<1x32x256xf32> to vector<32x256xf32>
    %197 = arith.mulf %196, %133 : vector<32x256xf32>
    %cst_83 = arith.constant dense<0.000000e+00> : vector<32xf32>
    %198 = vector.multi_reduction <add>, %197, %cst_83 [1] : vector<32x256xf32> to vector<32xf32>
    %199 = vector.shape_cast %198 : vector<32xf32> to vector<32x1xf32>
    %c5_i32_84 = arith.constant 5 : i32
    %200 = vector.broadcast %c5_i32_84 : i32 to vector<32x10xi32>
    %201 = arith.cmpi eq, %8, %200 : vector<32x10xi32>
    %cst_85 = arith.constant 0.000000e+00 : f32
    %202 = vector.shape_cast %199 : vector<32x1xf32> to vector<32x1xf32>
    %203 = vector.broadcast %202 : vector<32x1xf32> to vector<32x10xf32>
    %204 = vector.broadcast %cst_85 : f32 to vector<32x10xf32>
    %205 = arith.select %201, %203, %204 : vector<32x10xi1>, vector<32x10xf32>
    %206 = arith.addf %194, %205 : vector<32x10xf32>
    %c6_86 = arith.constant 6 : index
    %c0_87 = arith.constant 0 : index
    %c0_88 = arith.constant 0 : index
    %207 = vector.load %arg4[%c6_86, %c0_87, %c0_88] : memref<10x32x256xf32, #tpu.memory_space<vmem>>, vector<1x32x256xf32>
    %208 = vector.shape_cast %207 : vector<1x32x256xf32> to vector<32x256xf32>
    %209 = arith.mulf %208, %133 : vector<32x256xf32>
    %cst_89 = arith.constant dense<0.000000e+00> : vector<32xf32>
    %210 = vector.multi_reduction <add>, %209, %cst_89 [1] : vector<32x256xf32> to vector<32xf32>
    %211 = vector.shape_cast %210 : vector<32xf32> to vector<32x1xf32>
    %c6_i32_90 = arith.constant 6 : i32
    %212 = vector.broadcast %c6_i32_90 : i32 to vector<32x10xi32>
    %213 = arith.cmpi eq, %8, %212 : vector<32x10xi32>
    %cst_91 = arith.constant 0.000000e+00 : f32
    %214 = vector.shape_cast %211 : vector<32x1xf32> to vector<32x1xf32>
    %215 = vector.broadcast %214 : vector<32x1xf32> to vector<32x10xf32>
    %216 = vector.broadcast %cst_91 : f32 to vector<32x10xf32>
    %217 = arith.select %213, %215, %216 : vector<32x10xi1>, vector<32x10xf32>
    %218 = arith.addf %206, %217 : vector<32x10xf32>
    %c7_92 = arith.constant 7 : index
    %c0_93 = arith.constant 0 : index
    %c0_94 = arith.constant 0 : index
    %219 = vector.load %arg4[%c7_92, %c0_93, %c0_94] : memref<10x32x256xf32, #tpu.memory_space<vmem>>, vector<1x32x256xf32>
    %220 = vector.shape_cast %219 : vector<1x32x256xf32> to vector<32x256xf32>
    %221 = arith.mulf %220, %133 : vector<32x256xf32>
    %cst_95 = arith.constant dense<0.000000e+00> : vector<32xf32>
    %222 = vector.multi_reduction <add>, %221, %cst_95 [1] : vector<32x256xf32> to vector<32xf32>
    %223 = vector.shape_cast %222 : vector<32xf32> to vector<32x1xf32>
    %c7_i32_96 = arith.constant 7 : i32
    %224 = vector.broadcast %c7_i32_96 : i32 to vector<32x10xi32>
    %225 = arith.cmpi eq, %8, %224 : vector<32x10xi32>
    %cst_97 = arith.constant 0.000000e+00 : f32
    %226 = vector.shape_cast %223 : vector<32x1xf32> to vector<32x1xf32>
    %227 = vector.broadcast %226 : vector<32x1xf32> to vector<32x10xf32>
    %228 = vector.broadcast %cst_97 : f32 to vector<32x10xf32>
    %229 = arith.select %225, %227, %228 : vector<32x10xi1>, vector<32x10xf32>
    %230 = arith.addf %218, %229 : vector<32x10xf32>
    %c8_98 = arith.constant 8 : index
    %c0_99 = arith.constant 0 : index
    %c0_100 = arith.constant 0 : index
    %231 = vector.load %arg4[%c8_98, %c0_99, %c0_100] : memref<10x32x256xf32, #tpu.memory_space<vmem>>, vector<1x32x256xf32>
    %232 = vector.shape_cast %231 : vector<1x32x256xf32> to vector<32x256xf32>
    %233 = arith.mulf %232, %133 : vector<32x256xf32>
    %cst_101 = arith.constant dense<0.000000e+00> : vector<32xf32>
    %234 = vector.multi_reduction <add>, %233, %cst_101 [1] : vector<32x256xf32> to vector<32xf32>
    %235 = vector.shape_cast %234 : vector<32xf32> to vector<32x1xf32>
    %c8_i32_102 = arith.constant 8 : i32
    %236 = vector.broadcast %c8_i32_102 : i32 to vector<32x10xi32>
    %237 = arith.cmpi eq, %8, %236 : vector<32x10xi32>
    %cst_103 = arith.constant 0.000000e+00 : f32
    %238 = vector.shape_cast %235 : vector<32x1xf32> to vector<32x1xf32>
    %239 = vector.broadcast %238 : vector<32x1xf32> to vector<32x10xf32>
    %240 = vector.broadcast %cst_103 : f32 to vector<32x10xf32>
    %241 = arith.select %237, %239, %240 : vector<32x10xi1>, vector<32x10xf32>
    %242 = arith.addf %230, %241 : vector<32x10xf32>
    %c9_104 = arith.constant 9 : index
    %c0_105 = arith.constant 0 : index
    %c0_106 = arith.constant 0 : index
    %243 = vector.load %arg4[%c9_104, %c0_105, %c0_106] : memref<10x32x256xf32, #tpu.memory_space<vmem>>, vector<1x32x256xf32>
    %244 = vector.shape_cast %243 : vector<1x32x256xf32> to vector<32x256xf32>
    %245 = arith.mulf %244, %133 : vector<32x256xf32>
    %cst_107 = arith.constant dense<0.000000e+00> : vector<32xf32>
    %246 = vector.multi_reduction <add>, %245, %cst_107 [1] : vector<32x256xf32> to vector<32xf32>
    %247 = vector.shape_cast %246 : vector<32xf32> to vector<32x1xf32>
    %c9_i32_108 = arith.constant 9 : i32
    %248 = vector.broadcast %c9_i32_108 : i32 to vector<32x10xi32>
    %249 = arith.cmpi eq, %8, %248 : vector<32x10xi32>
    %cst_109 = arith.constant 0.000000e+00 : f32
    %250 = vector.shape_cast %247 : vector<32x1xf32> to vector<32x1xf32>
    %251 = vector.broadcast %250 : vector<32x1xf32> to vector<32x10xf32>
    %252 = vector.broadcast %cst_109 : f32 to vector<32x10xf32>
    %253 = arith.select %249, %251, %252 : vector<32x10xi1>, vector<32x10xf32>
    %254 = arith.addf %242, %253 : vector<32x10xf32>
    %cst_110 = arith.constant dense<0.000000e+00> : vector<10xf32>
    %255 = vector.multi_reduction <add>, %254, %cst_110 [0] : vector<32x10xf32> to vector<10xf32>
    %256 = vector.shape_cast %255 : vector<10xf32> to vector<1x10xf32>
    %257 = tpu.concatenate %132, %256 in 0 : vector<1x10xf32>, vector<1x10xf32> -> vector<2x10xf32>
    %c0_111 = arith.constant 0 : index
    %c0_112 = arith.constant 0 : index
    %258 = vector.load %arg5[%c0_111, %c0_112] : memref<1x10xf32, #tpu.memory_space<vmem>>, vector<1x10xf32>
    %259 = vector.broadcast %258 : vector<1x10xf32> to vector<2x10xf32>
    %260 = arith.addf %257, %259 : vector<2x10xf32>
    %c0_113 = arith.constant 0 : index
    %c0_114 = arith.constant 0 : index
    %261 = vector.load %arg6[%c0_113, %c0_114] : memref<2x10xf32, #tpu.memory_space<vmem>>, vector<2x10xf32>
    tpu.vector_store %arg6[%c0_113, %c0_114], %260 {strides = array<i32>} : memref<2x10xf32, #tpu.memory_space<vmem>>, vector<2x10xf32>,
    return
  }
  func.func @transform_0(%arg0: i32) -> (i32, i32) {
    %c0_i32 = arith.constant 0 : i32
    %c0_i32_0 = arith.constant 0 : i32
    return %c0_i32, %arg0 : i32, i32
  }
  func.func @transform_1(%arg0: i32) -> (i32, i32) {
    %c0_i32 = arith.constant 0 : i32
    %c0_i32_0 = arith.constant 0 : i32
    %c0_i32_1 = arith.constant 0 : i32
    return %c0_i32, %c0_i32_0 : i32, i32
  }
  func.func @transform_2(%arg0: i32) -> (i32, i32) {
    %c0_i32 = arith.constant 0 : i32
    %c0_i32_0 = arith.constant 0 : i32
    %c0_i32_1 = arith.constant 0 : i32
    return %c0_i32, %c0_i32_0 : i32, i32
  }
  func.func @transform_3(%arg0: i32) -> (i32, i32, i32) {
    %c0_i32 = arith.constant 0 : i32
    %c0_i32_0 = arith.constant 0 : i32
    %c0_i32_1 = arith.constant 0 : i32
    %c0_i32_2 = arith.constant 0 : i32
    return %c0_i32, %c0_i32_0, %c0_i32_1 : i32, i32, i32
  }
  func.func @transform_4(%arg0: i32) -> (i32, i32) {
    %c0_i32 = arith.constant 0 : i32
    %c0_i32_0 = arith.constant 0 : i32
    %c0_i32_1 = arith.constant 0 : i32
    return %c0_i32, %c0_i32_0 : i32, i32
  }
  func.func @transform_5(%arg0: i32) -> (i32, i32) {
    %c0_i32 = arith.constant 0 : i32
    %c0_i32_0 = arith.constant 0 : i32
    return %arg0, %c0_i32 : i32, i32
  }
}

</mosaic_0001>

<bundles_post_ra>
// kernel: cnn_forward.1
= control target key start
LH: loop header
LB: loop body
LE: loop exit
PB: predicated region body
PF: predicated region fallthrough
CT: control target
= control target key end

     0   :  { %vm127_vm0 = vcmask 1041408   ;;  %v1113_v14 = vmov 0   ;;  %s1957_s0 = inlined_call_operand.vmem [shape: bf16[36,512], index: 0, kind: input, shape index: {}]   ;;  %s1958_s1 = inlined_call_operand.vmem [shape: bf16[32,36], index: 1, kind: input, shape index: {}]   ;;  %s1959_s2 = inlined_call_operand.vmem [shape: f32[32,1], index: 2, kind: input, shape index: {}]   ;;  %s1960_s3 = inlined_call_operand.vmem [shape: f32[10,32,256], index: 3, kind: input, shape index: {}]   ;;  %s1961_s4 = inlined_call_operand.vmem [shape: f32[1,10], index: 4, kind: input, shape index: {}]   ;;  %s1962_s5 = inlined_call_operand.hbm [shape: f32[2,10], index: 5, kind: output, shape index: {}]  }
   0x1   :  { %v34_v0 = vld [vmem:[%s1957_s0 + $0x40] sm:$0x33]  ;;  %v35_v1 = vld [vmem:[%s1957_s0 + $0x48] sm:$0x33]  ;;  %172 = vmatprep.mubr.bf16.mxu0 %v1113_v14  ;;  %225 = vmatprep.mubr.bf16.mxu1 %v1113_v14  ;;  %v38_v18 = vld [vmem:[%s1959_s2 + $0x10] sm:$0xff] }
   0x2   :  { %v987_v2 = vcombine.high %v34_v0, %v34_v0  ;;  %v989_v3 = vcombine.high %v35_v1, %v35_v1  ;;  %v986_v4 = vcombine.low %v34_v0, %v34_v0  ;;  %v988_v5 = vcombine.low %v35_v1, %v35_v1  ;;  %v1077_v6 = vld [vmem:[%s1957_s0 + $0x24] ss:$16 sps:$4 sm:$0xff]   ;;  %v1079_v7 = vld [vmem:[%s1957_s0 + $0x2c] ss:$16 sps:$4 sm:$0xff]   ;;  %v1081_v8 = vld [vmem:[%s1957_s0 + $0x20] ss:$16 sps:$4 sm:$0xff]   ;;  %1071 = vset.pattern.permute.xlu0 %v1113_v14 }
   0x3   :  { %v1082_v11 = vld [vmem:[%s1957_s0 + $0x28] ss:$16 sps:$4 sm:$0xff]   ;;  %v1083_v12 = vld [vmem:[%s1957_s0 + $0x4] ss:$16 sps:$4 sm:$0xff]   ;;  %v1085_v13 = vld [vmem:[%s1957_s0 + $0xc] ss:$16 sps:$4 sm:$0xff]   ;;  %1072 = vset.pattern.permute.xlu1 %v1113_v14 }
   0x4   :  { %990 = vmatprep.subr.msk.bf16.mxu0 %vm127_vm0, %v987_v2  ;;  %993 = vmatprep.subr.msk.bf16.mxu1 %vm127_vm0, %v989_v3  ;;  %v129_v9 = vsel %vm127_vm0, %v986_v4, 0  ;;  %v135_v10 = vsel %vm127_vm0, %v988_v5, 0  ;;  %v1087_v15 = vld [vmem:[%s1957_s0] ss:$16 sps:$4 sm:$0xff]   ;;  %v1088_v17 = vld [vmem:[%s1957_s0 + $0x8] ss:$16 sps:$4 sm:$0xff]  }
   0x5   :  { %151 = vmatpush1.bf16.msra.mxu0 %v129_v9  ;;  %204 = vmatpush1.bf16.msra.mxu1 %v135_v10  ;;  %v36_v16 = vld [vmem:[%s1959_s2] sm:$0xff] }
   0x6   :  { %152 = vmatprep.subr.bf16.mxu0 %v1077_v6  ;;  %205 = vmatprep.subr.bf16.mxu1 %v1079_v7 }
   0x9   :  { %153 = vmatpush1.bf16.msra.mxu0 %v1081_v8  ;;  %206 = vmatpush1.bf16.msra.mxu1 %v1082_v11 }
   0xa   :  { %154 = vmatprep.subr.bf16.mxu0 %v1083_v12  ;;  %207 = vmatprep.subr.bf16.mxu1 %v1085_v13 }
   0xb   :  { %10 = vsyncpa [#allocation3], 0  ;;  %42 = vperm.xlu0 %1071, %v36_v16   ;;  %52 = vperm.xlu1 %1072, %v38_v18   ;;  %v1089_v19 = vld [vmem:[%s1958_s1] sm:$0xff]   ;;  %v37_v20 = vld [vmem:[%s1959_s2 + $0x8] sm:$0xff]  ;;  %vm120_vm1 = vcmask 293888   ;;  %vm643_vm12 = vcmask 80896  }
   0xc   :  { %v39_v21 = vld [vmem:[%s1959_s2 + $0x18] sm:$0xff]  ;;  %v1090_v22 = vld [vmem:[%s1958_s1 + $0x8] sm:$0xff]   ;;  %v1198_v33 = vld [vmem:[%s1960_s3 + $0x40] sm:$0xff]  ;;  %vm950_vm13 = vcmask 1040384   ;;  %s1114_s18 = smov [#allocation2]   ;;  %vm960_vm14 = vcmask 74752  }
   0xd   :  { %155 = vmatpush1.bf16.msra.mxu0 %v1087_v15  ;;  %208 = vmatpush1.bf16.msra.mxu1 %v1088_v17  ;;  %v1207_v36 = vld [vmem:[%s1960_s3 + $0x48] sm:$0xff]  ;;  %v264_v37 = vld [vmem:[%s1960_s3] sm:$0xff]  ;;  %s968_s19 = sshll.u32 %s1114_s18, 4  ;;  %s969_s19 = int_to_ptr.vmem [resolvable:$true] %s968_s19 }
   0xe   :  { %v265_v38 = vld [vmem:[%s1960_s3 + $0x8] sm:$0xff]  ;;  %v1012_v46 = vld [vmem:[%s1960_s3 + $0xc0] sm:$0xff]  ;;  %s1091_s20 = scalar_lea.vmem %s969_s19, 32  ;;  %p1096_p1 = scmp.lt.s32.totalorder %s969_s19, %s969_s19 }
   0xf   :  { %47 = vperm.xlu0 %1071, %v37_v20   ;;  %57 = vperm.xlu1 %1072, %v39_v21   ;;  %v1220_v40 = vld [vmem:[%s1960_s3 + $0x88] sm:$0xff]  ;;  %v1237_v47 = vld [vmem:[%s1960_s3 + $0x80] sm:$0xff]  ;;  %p1092_p0 = scmp.ne.s32.totalorder %s969_s19, %s1091_s20  ;;  %p1097_p2 = scmp.lt.s32.totalorder %s1091_s20, %s1091_s20 }
  0x10   :  { %991 = vmatmul.mubr.msk.bf16.vlgmr.msra.gmra.mxu0 %vm120_vm1, %v1089_v19  ;;  %994 = vmatmul.mubr.msk.bf16.vlgmr.msra.gmra.mxu1 %vm120_vm1, %v1089_v19  ;;  %v1013_v41 = vld [vmem:[%s1960_s3 + $0xc8] sm:$0xff]  ;;  %v1020_v56 = vld [vmem:[%s1960_s3 + $0x100] sm:$0xff] }
  0x11   :  { %182 = vmatprep.mubr.bf16.mxu0 %v1113_v14  ;;  %235 = vmatprep.mubr.bf16.mxu1 %v1113_v14  ;;  %v1021_v53 = vld [vmem:[%s1960_s3 + $0x108] sm:$0xff]  ;;  %v1028_v1 = vld [vmem:[%s1960_s3 + $0x140] sm:$0xff]  ;;  %p1098_p3 = por %p1097_p2, %p1096_p1 }
  0x12   :  { %v1029_v63 = vld [vmem:[%s1960_s3 + $0x148] sm:$0xff]  ;;  %v1036_v12 = vld [vmem:[%s1960_s3 + $0x180] sm:$0xff] }
  0x13   :  { %v1037_v7 = vld [vmem:[%s1960_s3 + $0x188] sm:$0xff]  ;;  %p1099_p4 = pnand %p1098_p3, %p1092_p0 }
  0x18   :  { %992 = vmatmul.mubr.msk.bf16.gmra.mxu0 %vm120_vm1, %v1090_v22  ;;  %995 = vmatmul.mubr.msk.bf16.gmra.mxu1 %vm120_vm1, %v1090_v22 }
  0x86   :  { %v43_v23 = vpop.permute.xlu0 %42 }
  0x8a   :  { %v1267_v8 = vpop.permute.xlu0 %47 }
  0xd0   :  { %v174_v24 = vpop.f32.mrf.mxu0  ;;  %v227_v25 = vpop.f32.mrf.mxu1 }
  0xd1   :  { %v175_v26 = vadd.f32 %v174_v24, %v43_v23  ;;  %v228_v27 = vadd.f32 %v227_v25, %v43_v23 }
  0xd2   :  { %v176_v28 = vpop.f32.mrf.mxu0  ;;  %v229_v29 = vpop.f32.mrf.mxu1 }
  0xd3   :  { %v177_v30 = vadd.f32 %v176_v28, %v43_v23  ;;  %v230_v31 = vadd.f32 %v229_v29, %v43_v23  ;;  %v1193_v32 = vmax.f32 %v175_v26, 0.0  ;;  %v1200_v34 = vmax.f32 %v228_v27, 0.0  ;;  %v1288_v26 = vld [vmem:[%s1960_s3 + $0x58] sm:$0xff] }
  0xd4   :  { %v178_v57 = vpop.f32.mrf.mxu0 }
  0xd5   :  { %v1202_v35 = vmax.f32 %v177_v30, 0.0  ;;  %v1215_v39 = vmax.f32 %v230_v31, 0.0  ;;  %v310_v42 = vmul.f32 %v1198_v33, %v1193_v32  ;;  %v272_v44 = vmul.f32 %v264_v37, %v1193_v32  ;;  %v1299_v30 = vld [vmem:[%s1960_s3 + $0x50] sm:$0xff] }
  0xd6   :  { %v741_v48 = vmul.f32 %v1012_v46, %v1200_v34  ;;  %v348_v54 = vmul.f32 %v1237_v47, %v1193_v32  ;;  %v769_v60 = vmul.f32 %v1020_v56, %v1200_v34  ;;  %v386_v62 = vmul.f32 %v1012_v46, %v1193_v32  ;;  %v180_v2 = vpop.f32.mrf.mxu0 }
  0xd7   :  { %v311_v43 = vmul.f32 %v1207_v36, %v1202_v35  ;;  %v273_v45 = vmul.f32 %v265_v38, %v1202_v35  ;;  %v349_v51 = vmul.f32 %v1220_v40, %v1202_v35  ;;  %v742_v52 = vmul.f32 %v1013_v41, %v1215_v39 }
  0xd8   :  { %v387_v55 = vmul.f32 %v1013_v41, %v1202_v35  ;;  %v770_v61 = vmul.f32 %v1021_v53, %v1215_v39  ;;  %v425_v4 = vmul.f32 %v1021_v53, %v1202_v35  ;;  %v797_v5 = vmul.f32 %v1028_v1, %v1200_v34  ;;  %v1306_v41 = vld [vmem:[%s1960_s3 + $0x98] sm:$0xff] }
  0xd9   :  { %v318_v49 = vadd.f32 %v311_v43, %v310_v42  ;;  %v280_v50 = vadd.f32 %v273_v45, %v272_v44  ;;  %v356_v58 = vadd.f32 %v349_v51, %v348_v54  ;;  %v749_v59 = vadd.f32 %v742_v52, %v741_v48  ;;  %v1313_v42 = vld [vmem:[%s1960_s3 + $0x90] sm:$0xff]  ;;  %v231_v43 = vpop.f32.mrf.mxu1 }
  0xda   :  { %v394_v0 = vadd.f32 %v387_v55, %v386_v62  ;;  %v777_v3 = vadd.f32 %v770_v61, %v769_v60  ;;  %v798_v6 = vmul.f32 %v1029_v63, %v1215_v39  ;;  %v424_v9 = vmul.f32 %v1020_v56, %v1193_v32  ;;  %v1338_v52 = vld [vmem:[%s1960_s3 + $0xd0] sm:$0xff] }
  0xdb   :  { %319 = vadd.xlane.f32.xlu1 %v318_v49  ;;  %281 = vadd.xlane.f32.xlu0 %v280_v50  ;;  %v181_v10 = vadd.f32 %v180_v2, %v1267_v8  ;;  %v463_v11 = vmul.f32 %v1029_v63, %v1202_v35  ;;  %v501_v15 = vmul.f32 %v1037_v7, %v1202_v35  ;;  %v1045_v49 = vld [vmem:[%s1960_s3 + $0x1c8] sm:$0xff]  ;;  %v1327_v50 = vld [vmem:[%s1960_s3 + $0xd8] sm:$0xff]  ;;  %v233_v53 = vpop.f32.mrf.mxu1  ;;  %v1354_v62 = vld [vmem:[%s1960_s3 + $0x110] sm:$0xff] }
  0xdc   :  { %v432_v13 = vadd.f32 %v425_v4, %v424_v9  ;;  %v805_v14 = vadd.f32 %v798_v6, %v797_v5  ;;  %v462_v16 = vmul.f32 %v1028_v1, %v1193_v32  ;;  %v179_v17 = vadd.f32 %v178_v57, %v1267_v8  ;;  %v1366_v4 = vld [vmem:[%s1960_s3 + $0x158] sm:$0xff]  ;;  %v1052_v9 = vld [vmem:[%s1960_s3 + $0x200] sm:$0xff] }
  0xdd   :  { %v500_v18 = vmul.f32 %v1036_v12, %v1193_v32  ;;  %v1279_v19 = vmax.f32 %v181_v10, 0.0  ;;  %v657_v21 = vmul.f32 %v264_v37, %v1200_v34  ;;  %v658_v23 = vmul.f32 %v265_v38, %v1215_v39  ;;  %v1379_v10 = vld [vmem:[%s1960_s3 + $0x150] sm:$0xff] }
  0xde   :  { %v470_v20 = vadd.f32 %v463_v11, %v462_v16  ;;  %v825_v24 = vmul.f32 %v1036_v12, %v1200_v34  ;;  %v826_v25 = vmul.f32 %v1037_v7, %v1215_v39  ;;  %v1290_v27 = vmax.f32 %v179_v17, 0.0 }
  0xdf   :  { %357 = vadd.xlane.f32.xlu1 %v356_v58  ;;  %750 = vadd.xlane.f32.xlu0 %v749_v59  ;;  %v508_v22 = vadd.f32 %v501_v15, %v500_v18  ;;  %v685_v28 = vmul.f32 %v1198_v33, %v1200_v34  ;;  %v686_v29 = vmul.f32 %v1207_v36, %v1215_v39  ;;  %v1346_v58 = vld [vmem:[%s1960_s3 + $0x118] sm:$0xff] }
  0xe0   :  { %v665_v31 = vadd.f32 %v658_v23, %v657_v21  ;;  %v833_v37 = vadd.f32 %v826_v25, %v825_v24  ;;  %v313_v38 = vmul.f32 %v1288_v26, %v1279_v19  ;;  %v312_v33 = vmul.f32 %v1299_v30, %v1290_v27  ;;  %v1061_v25 = vld [vmem:[%s1960_s3 + $0x248] sm:$0xff] }
  0xe1   :  { %v693_v36 = vadd.f32 %v686_v29, %v685_v28  ;;  %v713_v45 = vmul.f32 %v1237_v47, %v1200_v34  ;;  %v714_v46 = vmul.f32 %v1220_v40, %v1215_v39  ;;  %v351_v48 = vmul.f32 %v1306_v41, %v1279_v19  ;;  %v1044_v40 = vld [vmem:[%s1960_s3 + $0x1c0] sm:$0xff] }
  0xe2   :  { %v321_v44 = vadd.f32 %v313_v38, %v312_v33  ;;  %v350_v47 = vmul.f32 %v1313_v42, %v1290_v27  ;;  %v539_v51 = vmul.f32 %v1045_v49, %v1202_v35  ;;  %v389_v56 = vmul.f32 %v1327_v50, %v1279_v19  ;;  %v1060_v29 = vld [vmem:[%s1960_s3 + $0x240] sm:$0xff] }
  0xe3   :  { %395 = vadd.xlane.f32.xlu1 %v394_v0  ;;  %778 = vadd.xlane.f32.xlu0 %v777_v3  ;;  %v721_v54 = vadd.f32 %v714_v46, %v713_v45  ;;  %v538_v57 = vmul.f32 %v1044_v40, %v1193_v32  ;;  %v388_v59 = vmul.f32 %v1338_v52, %v1290_v27  ;;  %v1053_v3 = vld [vmem:[%s1960_s3 + $0x208] sm:$0xff] }
  0xe4   :  { %v359_v55 = vadd.f32 %v351_v48, %v350_v47  ;;  %v234_v60 = vadd.f32 %v233_v53, %v1267_v8  ;;  %v853_v0 = vmul.f32 %v1044_v40, %v1200_v34  ;;  %v854_v1 = vmul.f32 %v1045_v49, %v1215_v39 }
  0xe5   :  { %v546_v61 = vadd.f32 %v539_v51, %v538_v57  ;;  %v397_v63 = vadd.f32 %v389_v56, %v388_v59  ;;  %v427_v2 = vmul.f32 %v1346_v58, %v1279_v19  ;;  %v232_v5 = vadd.f32 %v231_v43, %v1267_v8  ;;  %v53_v51 = vpop.permute.xlu1 %52 }
  0xe6   :  { %v426_v6 = vmul.f32 %v1354_v62, %v1290_v27  ;;  %v1371_v7 = vmax.f32 %v234_v60, 0.0  ;;  %v861_v11 = vadd.f32 %v854_v1, %v853_v0  ;;  %v577_v8 = vmul.f32 %v1053_v3, %v1202_v35 }
  0xe7   :  { %433 = vadd.xlane.f32.xlu1 %v432_v13  ;;  %806 = vadd.xlane.f32.xlu0 %v805_v14  ;;  %v465_v13 = vmul.f32 %v1366_v4, %v1279_v19  ;;  %v267_v14 = vld [vmem:[%s1960_s3 + $0x18] sm:$0xff]  ;;  %v1387_v15 = vmax.f32 %v232_v5, 0.0  ;;  %v576_v16 = vmul.f32 %v1052_v9, %v1193_v32  ;;  %v464_v17 = vmul.f32 %v1379_v10, %v1290_v27 }
  0xe8   :  { %v435_v12 = vadd.f32 %v427_v2, %v426_v6  ;;  %v881_v18 = vmul.f32 %v1052_v9, %v1200_v34  ;;  %v882_v23 = vmul.f32 %v1053_v3, %v1215_v39  ;;  %v660_v24 = vmul.f32 %v267_v14, %v1371_v7  ;;  %v1055_v2 = vld [vmem:[%s1960_s3 + $0x218] sm:$0xff] }
  0xe9   :  { %v584_v21 = vadd.f32 %v577_v8, %v576_v16  ;;  %v615_v38 = vmul.f32 %v1061_v25, %v1202_v35  ;;  %v688_v33 = vmul.f32 %v1288_v26, %v1371_v7  ;;  %v687_v43 = vmul.f32 %v1299_v30, %v1387_v15  ;;  %v1047_v35 = vld [vmem:[%s1960_s3 + $0x1d8] sm:$0xff]  ;;  %v184_v26 = vpop.f32.mrf.mxu0  ;;  %v237_v30 = vpop.f32.mrf.mxu1 }
  0xea   :  { %v910_v48 = vmul.f32 %v1061_v25, %v1215_v39  ;;  %v716_v49 = vmul.f32 %v1306_v41, %v1371_v7  ;;  %v275_v40 = vmul.f32 %v267_v14, %v1279_v19  ;;  %v541_v41 = vmul.f32 %v1047_v35, %v1279_v19 }
  0xeb   :  { %471 = vadd.xlane.f32.xlu1 %v470_v20  ;;  %509 = vadd.xlane.f32.xlu0 %v508_v22  ;;  %v266_v20 = vld [vmem:[%s1960_s3 + $0x10] sm:$0xff]  ;;  %v473_v22 = vadd.f32 %v465_v13, %v464_v17  ;;  %v696_v46 = vadd.f32 %v688_v33, %v687_v43  ;;  %v185_v53 = vadd.f32 %v184_v26, %v53_v51  ;;  %v239_v57 = vpop.f32.mrf.mxu1 }
  0xec   :  { %v659_v28 = vmul.f32 %v266_v20, %v1387_v15  ;;  %v238_v59 = vadd.f32 %v237_v30, %v53_v51  ;;  %v240_v60 = vadd.f32 %v239_v57, %v53_v51  ;;  %v744_v0 = vmul.f32 %v1327_v50, %v1371_v7  ;;  %v1064_v50 = vld [vmem:[%s1960_s3 + $0x260] sm:$0xff]  ;;  %v1062_v43 = vld [vmem:[%s1960_s3 + $0x250] sm:$0xff] }
  0xed   :  { %v856_v1 = vmul.f32 %v1047_v35, %v1371_v7  ;;  %v1433_v3 = vmax.f32 %v185_v53, 0.0  ;;  %v743_v5 = vmul.f32 %v1338_v52, %v1387_v15  ;;  %v1065_v52 = vld [vmem:[%s1960_s3 + $0x268] sm:$0xff]  ;;  %v579_v17 = vmul.f32 %v1055_v2, %v1279_v19 }
  0xee   :  { %v1448_v8 = vmax.f32 %v238_v59, 0.0  ;;  %v1450_v13 = vmax.f32 %v240_v60, 0.0  ;;  %v799_v33 = vmul.f32 %v1379_v10, %v1387_v15 }
  0xef   :  { %666 = vadd.xlane.f32.xlu1 %v665_v31  ;;  %834 = vadd.xlane.f32.xlu0 %v833_v37  ;;  %v889_v31 = vadd.f32 %v882_v23, %v881_v18  ;;  %v668_v37 = vadd.f32 %v660_v24, %v659_v28  ;;  %v752_v14 = vadd.f32 %v744_v0, %v743_v5  ;;  %v1522_v0 = vld [vmem:[%s1960_s3 + $0xe0] sm:$0xff]  ;;  %v1041_v5 = vld [vmem:[%s1960_s3 + $0x1a8] sm:$0xff] }
  0xf0   :  { %v771_v18 = vmul.f32 %v1354_v62, %v1387_v15  ;;  %v913_v23 = vmul.f32 %v1064_v50, %v1448_v8  ;;  %v914_v24 = vmul.f32 %v1065_v52, %v1450_v13  ;;  %v800_v28 = vmul.f32 %v1366_v4, %v1371_v7 }
  0xf3   :  { %694 = vadd.xlane.f32.xlu1 %v693_v36  ;;  %322 = vadd.xlane.f32.xlu0 %v321_v44  ;;  %v614_v36 = vmul.f32 %v1060_v29, %v1193_v32  ;;  %v909_v44 = vmul.f32 %v1060_v29, %v1200_v34  ;;  %v715_v32 = vmul.f32 %v1313_v42, %v1387_v15  ;;  %v1046_v34 = vld [vmem:[%s1960_s3 + $0x1d0] sm:$0xff] }
  0xf4   :  { %v540_v42 = vmul.f32 %v1046_v34, %v1290_v27  ;;  %v855_v6 = vmul.f32 %v1046_v34, %v1387_v15  ;;  %v884_v29 = vmul.f32 %v1055_v2, %v1371_v7  ;;  %v1000_v34 = vld [vmem:[%s1960_s3 + $0x60] sm:$0xff] }
  0xf5   :  { %v622_v45 = vadd.f32 %v615_v38, %v614_v36  ;;  %v917_v47 = vadd.f32 %v910_v48, %v909_v44  ;;  %v724_v39 = vadd.f32 %v716_v49, %v715_v32  ;;  %v1474_v38 = vadd.f32 %v914_v24, %v913_v23  ;;  %v1038_v36 = vld [vmem:[%s1960_s3 + $0x190] sm:$0xff]  ;;  %v1040_v2 = vld [vmem:[%s1960_s3 + $0x1a0] sm:$0xff] }
  0xf6   :  { %v864_v16 = vadd.f32 %v856_v1, %v855_v6  ;;  %v808_v44 = vadd.f32 %v800_v28, %v799_v33  ;;  %v502_v10 = vmul.f32 %v1038_v36, %v1290_v27  ;;  %v616_v49 = vmul.f32 %v1062_v43, %v1290_v27  ;;  %v1527_v1 = vld [vmem:[%s1960_s3 + $0xe8] sm:$0xff]  ;;  %v1560_v24 = vld [vmem:[%s1960_s3 + $0x160] sm:$0xff] }
  0xf7   :  { %722 = vadd.xlane.f32.xlu1 %v721_v54  ;;  %360 = vadd.xlane.f32.xlu0 %v359_v55  ;;  %v186_v54 = vpop.f32.mrf.mxu0  ;;  %v274_v55 = vmul.f32 %v266_v20, %v1290_v27  ;;  %v830_v23 = vmul.f32 %v1041_v5, %v1450_v13  ;;  %v1048_v28 = vld [vmem:[%s1960_s3 + $0x1e0] sm:$0xff] }
  0xf8   :  { %v187_v56 = vadd.f32 %v186_v54, %v53_v51 }
  0xf9   :  { %v188_v33 = vpop.f32.mrf.mxu0 }
  0xfa   :  { %v1438_v9 = vmax.f32 %v187_v56, 0.0  ;;  %v1009_v56 = vld [vmem:[%s1960_s3 + $0xa8] sm:$0xff] }
  0xfb   :  { %547 = vadd.xlane.f32.xlu1 %v546_v61  ;;  %398 = vadd.xlane.f32.xlu0 %v397_v63  ;;  %v283_v61 = vadd.f32 %v275_v40, %v274_v55  ;;  %v549_v63 = vadd.f32 %v541_v41, %v540_v42  ;;  %v314_v40 = vmul.f32 %v1000_v34, %v1433_v3  ;;  %v1008_v42 = vld [vmem:[%s1960_s3 + $0xa0] sm:$0xff] }
  0xfc   :  { %v353_v57 = vmul.f32 %v1009_v56, %v1438_v9 }
  0xff   :  { %862 = vadd.xlane.f32.xlu1 %v861_v11  ;;  %436 = vadd.xlane.f32.xlu0 %v435_v12  ;;  %v772_v11 = vmul.f32 %v1346_v58, %v1371_v7  ;;  %v1054_v12 = vld [vmem:[%s1960_s3 + $0x210] sm:$0xff]  ;;  %v618_v58 = vmul.f32 %v1064_v50, %v1433_v3  ;;  %v390_v50 = vmul.f32 %v1522_v0, %v1433_v3 }
 0x100   :  { %v578_v20 = vmul.f32 %v1054_v12, %v1290_v27  ;;  %v883_v4 = vmul.f32 %v1054_v12, %v1387_v15  ;;  %v269_v27 = vld [vmem:[%s1960_s3 + $0x28] sm:$0xff]  ;;  %v391_v12 = vmul.f32 %v1527_v1, %v1438_v9 }
 0x101   :  { %v277_v55 = vmul.f32 %v269_v27, %v1438_v9 }
 0x102   :  { %v587_v25 = vadd.f32 %v579_v17, %v578_v20  ;;  %v1549_v17 = vld [vmem:[%s1960_s3 + $0x128] sm:$0xff]  ;;  %v400_v20 = vadd.f32 %v391_v12, %v390_v50  ;;  %v1618_v12 = vld [vmem:[%s1960_s3 + $0x70] sm:$0xff] }
 0x103   :  { %585 = vadd.xlane.f32.xlu1 %v584_v21  ;;  %474 = vadd.xlane.f32.xlu0 %v473_v22  ;;  %v619_v21 = vmul.f32 %v1065_v52, %v1438_v9  ;;  %v780_v22 = vadd.f32 %v772_v11, %v771_v18  ;;  %v504_v52 = vmul.f32 %v1040_v2, %v1433_v3 }
 0x105   :  { %v1466_v62 = vadd.f32 %v619_v21, %v618_v58  ;;  %v429_v58 = vmul.f32 %v1549_v17, %v1438_v9 }
 0x107   :  { %890 = vadd.xlane.f32.xlu1 %v889_v31  ;;  %669 = vadd.xlane.f32.xlu0 %v668_v37  ;;  %v1039_v31 = vld [vmem:[%s1960_s3 + $0x198] sm:$0xff] }
 0x108   :  { %v1063_v37 = vld [vmem:[%s1960_s3 + $0x258] sm:$0xff]  ;;  %v828_v32 = vmul.f32 %v1039_v31, %v1371_v7 }
 0x109   :  { %v617_v48 = vmul.f32 %v1063_v37, %v1279_v19  ;;  %v912_v30 = vmul.f32 %v1063_v37, %v1371_v7  ;;  %v827_v7 = vmul.f32 %v1038_v36, %v1387_v15  ;;  %v466_v37 = vmul.f32 %v1560_v24, %v1433_v3 }
 0x10b   :  { %623 = vadd.xlane.f32.xlu1 %v622_v45  ;;  %697 = vadd.xlane.f32.xlu0 %v696_v46  ;;  %v892_v45 = vadd.f32 %v884_v29, %v883_v4  ;;  %v503_v46 = vmul.f32 %v1039_v31, %v1279_v19  ;;  %v625_v26 = vadd.f32 %v617_v48, %v616_v49  ;;  %v1001_v19 = vld [vmem:[%s1960_s3 + $0x68] sm:$0xff]  ;;  %v58_v48 = vpop.permute.xlu1 %57 }
 0x10c   :  { %v315_v41 = vmul.f32 %v1001_v19, %v1438_v9  ;;  %v836_v51 = vadd.f32 %v828_v32, %v827_v7  ;;  %v1049_v29 = vld [vmem:[%s1960_s3 + $0x1e8] sm:$0xff]  ;;  %v718_v7 = vmul.f32 %v1009_v56, %v1450_v13  ;;  %v746_v56 = vmul.f32 %v1527_v1, %v1450_v13 }
 0x10d   :  { %v511_v35 = vadd.f32 %v503_v46, %v502_v10  ;;  %v662_v46 = vmul.f32 %v269_v27, %v1450_v13  ;;  %v190_v10 = vpop.f32.mrf.mxu0  ;;  %v858_v32 = vmul.f32 %v1049_v29, %v1450_v13  ;;  %v717_v27 = vmul.f32 %v1008_v42, %v1448_v8 }
 0x10e   :  { %v324_v59 = vadd.f32 %v315_v41, %v314_v40  ;;  %v774_v1 = vmul.f32 %v1549_v17, %v1450_v13 }
 0x10f   :  { %918 = vadd.xlane.f32.xlu1 %v917_v47  ;;  %725 = vadd.xlane.f32.xlu0 %v724_v39  ;;  %v268_v47 = vld [vmem:[%s1960_s3 + $0x20] sm:$0xff]  ;;  %v911_v39 = vmul.f32 %v1062_v43, %v1387_v15  ;;  %v352_v15 = vmul.f32 %v1008_v42, %v1433_v3  ;;  %v542_v43 = vmul.f32 %v1048_v28, %v1433_v3 }
 0x110   :  { %v276_v54 = vmul.f32 %v268_v47, %v1433_v3 }
 0x111   :  { %v920_v53 = vadd.f32 %v912_v30, %v911_v39  ;;  %v362_v6 = vadd.f32 %v353_v57, %v352_v15  ;;  %v1056_v30 = vld [vmem:[%s1960_s3 + $0x220] sm:$0xff]  ;;  %v241_v39 = vpop.f32.mrf.mxu1  ;;  %v727_v15 = vadd.f32 %v718_v7, %v717_v27  ;;  %v745_v57 = vmul.f32 %v1522_v0, %v1448_v8 }
 0x112   :  { %v286_v60 = vadd.f32 %v277_v55, %v276_v54 }
 0x113   :  { %284 = vadd.xlane.f32.xlu1 %v283_v61  ;;  %550 = vadd.xlane.f32.xlu0 %v549_v63  ;;  %v689_v61 = vmul.f32 %v1000_v34, %v1448_v8  ;;  %v690_v63 = vmul.f32 %v1001_v19, %v1450_v13  ;;  %v1057_v34 = vld [vmem:[%s1960_s3 + $0x228] sm:$0xff]  ;;  %v189_v19 = vadd.f32 %v188_v33, %v58_v48  ;;  %v243_v42 = vpop.f32.mrf.mxu1  ;;  %v1655_v33 = vld [vmem:[%s1960_s3 + $0xf8] sm:$0xff] }
 0x114   :  { %v244_v0 = vadd.f32 %v243_v42, %v58_v48  ;;  %v1051_v42 = vld [vmem:[%s1960_s3 + $0x1f8] sm:$0xff] }
 0x115   :  { %v699_v11 = vadd.f32 %v690_v63, %v689_v61  ;;  %v1593_v54 = vmax.f32 %v189_v19, 0.0  ;;  %v271_v61 = vld [vmem:[%s1960_s3 + $0x38] sm:$0xff]  ;;  %v242_v63 = vadd.f32 %v241_v39, %v58_v48 }
 0x117   :  { %753 = vadd.xlane.f32.xlu1 %v752_v14  ;;  %865 = vadd.xlane.f32.xlu0 %v864_v16  ;;  %v505_v14 = vmul.f32 %v1041_v5, %v1438_v9  ;;  %v1544_v16 = vld [vmem:[%s1960_s3 + $0x120] sm:$0xff]  ;;  %v755_v5 = vadd.f32 %v746_v56, %v745_v57  ;;  %v1050_v57 = vld [vmem:[%s1960_s3 + $0x1f0] sm:$0xff] }
 0x118   :  { %v428_v18 = vmul.f32 %v1544_v16, %v1433_v3 }
 0x119   :  { %v514_v21 = vadd.f32 %v505_v14, %v504_v52  ;;  %v1623_v52 = vld [vmem:[%s1960_s3 + $0x78] sm:$0xff]  ;;  %v1625_v14 = vmax.f32 %v242_v63, 0.0 }
 0x11a   :  { %v438_v31 = vadd.f32 %v429_v58, %v428_v18  ;;  %v801_v18 = vmul.f32 %v1560_v24, %v1448_v8 }
 0x11b   :  { %781 = vadd.xlane.f32.xlu1 %v780_v22  ;;  %588 = vadd.xlane.f32.xlu0 %v587_v25  ;;  %v829_v22 = vmul.f32 %v1040_v2, %v1448_v8  ;;  %v1565_v25 = vld [vmem:[%s1960_s3 + $0x168] sm:$0xff]  ;;  %v773_v2 = vmul.f32 %v1544_v16, %v1448_v8  ;;  %v1627_v16 = vmax.f32 %v244_v0, 0.0 }
 0x11c   :  { %v467_v36 = vmul.f32 %v1565_v25, %v1438_v9 }
 0x11d   :  { %v839_v4 = vadd.f32 %v830_v23, %v829_v22  ;;  %v783_v17 = vadd.f32 %v774_v1, %v773_v2  ;;  %v1010_v23 = vld [vmem:[%s1960_s3 + $0xb0] sm:$0xff]  ;;  %v692_v63 = vmul.f32 %v1623_v52, %v1627_v16  ;;  %v859_v2 = vmul.f32 %v1050_v57, %v1625_v14 }
 0x11e   :  { %v476_v49 = vadd.f32 %v467_v36, %v466_v37  ;;  %v1650_v37 = vld [vmem:[%s1960_s3 + $0xf0] sm:$0xff]  ;;  %v1035_v36 = vld [vmem:[%s1960_s3 + $0x178] sm:$0xff]  ;;  %v860_v1 = vmul.f32 %v1051_v42, %v1627_v16 }
 0x11f   :  { %809 = vadd.xlane.f32.xlu1 %v808_v44  ;;  %893 = vadd.xlane.f32.xlu0 %v892_v45  ;;  %v543_v44 = vmul.f32 %v1049_v29, %v1438_v9  ;;  %v661_v45 = vmul.f32 %v268_v47, %v1448_v8  ;;  %v191_v47 = vadd.f32 %v190_v10, %v58_v48 }
 0x120   :  { %v354_v29 = vmul.f32 %v1010_v23, %v1593_v54  ;;  %v392_v48 = vmul.f32 %v1650_v37, %v1593_v54 }
 0x121   :  { %v671_v40 = vadd.f32 %v662_v46, %v661_v45  ;;  %v1595_v55 = vmax.f32 %v191_v47, 0.0 }
 0x123   :  { %512 = vadd.xlane.f32.xlu1 %v511_v35  ;;  %626 = vadd.xlane.f32.xlu0 %v625_v26  ;;  %v552_v35 = vadd.f32 %v543_v44, %v542_v43  ;;  %v857_v26 = vmul.f32 %v1048_v28, %v1448_v8  ;;  %v317_v22 = vmul.f32 %v1623_v52, %v1595_v55  ;;  %v1011_v28 = vld [vmem:[%s1960_s3 + $0xb8] sm:$0xff] }
 0x124   :  { %v804_v44 = vmul.f32 %v1035_v36, %v1627_v16  ;;  %v393_v10 = vmul.f32 %v1655_v33, %v1595_v55  ;;  %v1059_v52 = vld [vmem:[%s1960_s3 + $0x238] sm:$0xff] }
 0x125   :  { %v867_v41 = vadd.f32 %v858_v32, %v857_v26  ;;  %v1678_v26 = vld [vmem:[%s1960_s3 + $0x130] sm:$0xff]  ;;  %v1683_v32 = vld [vmem:[%s1960_s3 + $0x138] sm:$0xff] }
 0x126   :  { %v403_v19 = vadd.f32 %v393_v10, %v392_v48  ;;  %v430_v27 = vmul.f32 %v1678_v26, %v1593_v54  ;;  %v431_v7 = vmul.f32 %v1683_v32, %v1595_v55  ;;  %v1067_v48 = vld [vmem:[%s1960_s3 + $0x278] sm:$0xff] }
 0x127   :  { %837 = vadd.xlane.f32.xlu1 %v836_v51  ;;  %921 = vadd.xlane.f32.xlu0 %v920_v53  ;;  %v580_v51 = vmul.f32 %v1056_v30, %v1433_v3  ;;  %v581_v53 = vmul.f32 %v1057_v34, %v1438_v9  ;;  %v886_v3 = vmul.f32 %v1057_v34, %v1450_v13  ;;  %v270_v9 = vld [vmem:[%s1960_s3 + $0x30] sm:$0xff] }
 0x128   :  { %v278_v50 = vmul.f32 %v270_v9, %v1593_v54 }
 0x12b   :  { %325 = vadd.xlane.f32.xlu1 %v324_v59  ;;  %287 = vadd.xlane.f32.xlu0 %v286_v60  ;;  %v590_v59 = vadd.f32 %v581_v53, %v580_v51  ;;  %v885_v60 = vmul.f32 %v1056_v30, %v1448_v8  ;;  %v663_v8 = vmul.f32 %v270_v9, %v1625_v14 }
 0x12c   :  { %v441_v51 = vadd.f32 %v431_v7, %v430_v27  ;;  %v545_v9 = vmul.f32 %v1051_v42, %v1595_v55 }
 0x12f   :  { %363 = vadd.xlane.f32.xlu1 %v362_v6  ;;  %700 = vadd.xlane.f32.xlu0 %v699_v11  ;;  %v895_v6 = vadd.f32 %v886_v3, %v885_v60  ;;  %v279_v11 = vmul.f32 %v271_v61, %v1595_v55  ;;  %v544_v60 = vmul.f32 %v1050_v57, %v1593_v54 }
 0x131   :  { %v289_v58 = vadd.f32 %v279_v11, %v278_v50  ;;  %v555_v50 = vadd.f32 %v545_v9, %v544_v60 }
 0x133   :  { %401 = vadd.xlane.f32.xlu1 %v400_v20  ;;  %515 = vadd.xlane.f32.xlu0 %v514_v21  ;;  %v802_v20 = vmul.f32 %v1565_v25, %v1450_v13  ;;  %v316_v21 = vmul.f32 %v1618_v12, %v1593_v54  ;;  %v664_v13 = vmul.f32 %v271_v61, %v1627_v16 }
 0x134   :  { %v691_v61 = vmul.f32 %v1618_v12, %v1625_v14  ;;  %v1058_v12 = vld [vmem:[%s1960_s3 + $0x230] sm:$0xff] }
 0x135   :  { %v811_v24 = vadd.f32 %v802_v20, %v801_v18  ;;  %v327_v25 = vadd.f32 %v317_v22, %v316_v21  ;;  %v674_v45 = vadd.f32 %v664_v13, %v663_v8  ;;  %v582_v21 = vmul.f32 %v1058_v12, %v1593_v54 }
 0x136   :  { %v702_v11 = vadd.f32 %v692_v63, %v691_v61  ;;  %v583_v22 = vmul.f32 %v1059_v52, %v1595_v55  ;;  %v747_v8 = vmul.f32 %v1650_v37, %v1625_v14  ;;  %v748_v13 = vmul.f32 %v1655_v33, %v1627_v16 }
 0x137   :  { %439 = vadd.xlane.f32.xlu1 %v438_v31  ;;  %840 = vadd.xlane.f32.xlu0 %v839_v4  ;;  %v355_v31 = vmul.f32 %v1011_v28, %v1595_v55  ;;  %v1034_v4 = vld [vmem:[%s1960_s3 + $0x170] sm:$0xff]  ;;  %v775_v37 = vmul.f32 %v1678_v26, %v1625_v14  ;;  %v776_v33 = vmul.f32 %v1683_v32, %v1627_v16 }
 0x138   :  { %v803_v43 = vmul.f32 %v1034_v4, %v1625_v14  ;;  %v468_v53 = vmul.f32 %v1034_v4, %v1593_v54  ;;  %v887_v4 = vmul.f32 %v1058_v12, %v1625_v14 }
 0x139   :  { %v365_v46 = vadd.f32 %v355_v31, %v354_v29  ;;  %v593_v31 = vadd.f32 %v583_v22, %v582_v21 }
 0x13a   :  { %v814_v30 = vadd.f32 %v804_v44, %v803_v43  ;;  %v758_v44 = vadd.f32 %v748_v13, %v747_v8 }
 0x13b   :  { %477 = vadd.xlane.f32.xlu1 %v476_v49  ;;  %553 = vadd.xlane.f32.xlu0 %v552_v35  ;;  %v1042_v49 = vld [vmem:[%s1960_s3 + $0x1b0] sm:$0xff]  ;;  %v1043_v35 = vld [vmem:[%s1960_s3 + $0x1b8] sm:$0xff] }
 0x13c   :  { %v506_v34 = vmul.f32 %v1042_v49, %v1593_v54  ;;  %v507_v47 = vmul.f32 %v1043_v35, %v1595_v55  ;;  %v831_v39 = vmul.f32 %v1042_v49, %v1625_v14 }
 0x13f   :  { %672 = vadd.xlane.f32.xlu1 %v671_v40  ;;  %868 = vadd.xlane.f32.xlu0 %v867_v41  ;;  %v832_v40 = vmul.f32 %v1043_v35, %v1627_v16  ;;  %v517_v41 = vadd.f32 %v507_v47, %v506_v34  ;;  %v621_v34 = vmul.f32 %v1067_v48, %v1595_v55 }
 0x141   :  { %v842_v56 = vadd.f32 %v832_v40, %v831_v39 }
 0x143   :  { %728 = vadd.xlane.f32.xlu1 %v727_v15  ;;  %591 = vadd.xlane.f32.xlu0 %v590_v59  ;;  %v469_v15 = vmul.f32 %v1035_v36, %v1595_v55  ;;  %v262_v59 = vlaneseq  ;;  %v888_v36 = vmul.f32 %v1059_v52, %v1627_v16 }
 0x145   :  { %v479_v3 = vadd.f32 %v469_v15, %v468_v53  ;;  %v1707_v0 = vand.u32 127, %v262_v59  ;;  %v898_v32 = vadd.f32 %v888_v36, %v887_v4  ;;  %v916_v53 = vmul.f32 %v1067_v48, %v1627_v16 }
 0x147   :  { %756 = vadd.xlane.f32.xlu1 %v755_v5  ;;  %896 = vadd.xlane.f32.xlu0 %v895_v6  ;;  %v719_v5 = vmul.f32 %v1010_v23, %v1625_v14  ;;  %v720_v6 = vmul.f32 %v1011_v28, %v1627_v16  ;;  %vm330_vm2 = vcmp.eq.s32.totalorder %v1707_v0, 1  ;;  %vm292_vm3 = vcmp.eq.s32.totalorder %v1707_v0, 0 }
 0x148   :  { %vm368_vm4 = vcmp.eq.s32.totalorder %v1707_v0, 2  ;;  %vm406_vm5 = vcmp.eq.s32.totalorder %v1707_v0, 3  ;;  %vm444_vm6 = vcmp.eq.s32.totalorder %v1707_v0, 4  ;;  %vm482_vm7 = vcmp.eq.s32.totalorder %v1707_v0, 5 }
 0x149   :  { %v730_v20 = vadd.f32 %v720_v6, %v719_v5  ;;  %vm520_vm8 = vcmp.eq.s32.totalorder %v1707_v0, 6  ;;  %vm558_vm9 = vcmp.eq.s32.totalorder %v1707_v0, 7  ;;  %vm596_vm10 = vcmp.eq.s32.totalorder %v1707_v0, 8 }
 0x14a   :  { %vm634_vm11 = vcmp.eq.s32.totalorder %v1707_v0, 9  ;;  %v1068_v0 = vld [vmem:[%s1961_s4] ss:$0 sm:$0xff] }
 0x14b   :  { %784 = vadd.xlane.f32.xlu1 %v783_v17  ;;  %290 = vadd.xlane.f32.xlu0 %v289_v58  ;;  %v870_v58 = vadd.f32 %v860_v1, %v859_v2 }
 0x14f   :  { %812 = vadd.xlane.f32.xlu1 %v811_v24  ;;  %328 = vadd.xlane.f32.xlu0 %v327_v25 }
 0x153   :  { %675 = vadd.xlane.f32.xlu1 %v674_v45  ;;  %366 = vadd.xlane.f32.xlu0 %v365_v46  ;;  %v1066_v45 = vld [vmem:[%s1960_s3 + $0x270] sm:$0xff] }
 0x154   :  { %v620_v35 = vmul.f32 %v1066_v45, %v1593_v54 }
 0x156   :  { %v631_v39 = vadd.f32 %v621_v34, %v620_v35 }
 0x157   :  { %815 = vadd.xlane.f32.xlu1 %v814_v30  ;;  %404 = vadd.xlane.f32.xlu0 %v403_v19  ;;  %v786_v30 = vadd.f32 %v776_v33, %v775_v37 }
 0x15b   :  { %518 = vadd.xlane.f32.xlu1 %v517_v41  ;;  %442 = vadd.xlane.f32.xlu0 %v441_v51  ;;  %v915_v51 = vmul.f32 %v1066_v45, %v1625_v14 }
 0x15f   :  { %843 = vadd.xlane.f32.xlu1 %v842_v56  ;;  %480 = vadd.xlane.f32.xlu0 %v479_v3  ;;  %v926_v56 = vadd.f32 %v916_v53, %v915_v51 }
 0x163   :  { %556 = vadd.xlane.f32.xlu1 %v555_v50  ;;  %703 = vadd.xlane.f32.xlu0 %v702_v11 }
 0x164   :  { %v320_v17 = vpop.xlane.xlu1 %319  ;;  %v282_v18 = vpop.xlane.xlu0 %281 }
 0x165   :  { %v331_v23 = vsel %vm330_vm2, %v320_v17, 0.0  ;;  %v293_v28 = vsel %vm292_vm3, %v282_v18, 0.0 }
 0x166   :  { %v335_v24 = vadd.f32 %v331_v23, %v293_v28 }
 0x167   :  { %871 = vadd.xlane.f32.xlu1 %v870_v58  ;;  %731 = vadd.xlane.f32.xlu0 %v730_v20 }
 0x168   :  { %v358_v25 = vpop.xlane.xlu1 %357  ;;  %v751_v29 = vpop.xlane.xlu0 %750 }
 0x169   :  { %v369_v43 = vsel %vm368_vm4, %v358_v25, 0.0  ;;  %v761_v1 = vsel %vm406_vm5, %v751_v29, 0.0 }
 0x16a   :  { %v373_v46 = vadd.f32 %v369_v43, %v335_v24 }
 0x16b   :  { %594 = vadd.xlane.f32.xlu1 %v593_v31  ;;  %759 = vadd.xlane.f32.xlu0 %v758_v44 }
 0x16c   :  { %v396_v10 = vpop.xlane.xlu1 %395  ;;  %v779_v49 = vpop.xlane.xlu0 %778 }
 0x16d   :  { %v407_v26 = vsel %vm406_vm5, %v396_v10, 0.0  ;;  %v789_v11 = vsel %vm444_vm6, %v779_v49, 0.0 }
 0x16e   :  { %v411_v19 = vadd.f32 %v407_v26, %v373_v46 }
 0x16f   :  { %899 = vadd.xlane.f32.xlu1 %v898_v32  ;;  %787 = vadd.xlane.f32.xlu0 %v786_v30 }
 0x170   :  { %v434_v47 = vpop.xlane.xlu1 %433  ;;  %v807_v27 = vpop.xlane.xlu0 %806 }
 0x171   :  { %v445_v7 = vsel %vm444_vm6, %v434_v47, 0.0  ;;  %v817_v18 = vsel %vm482_vm7, %v807_v27, 0.0 }
 0x172   :  { %v449_v40 = vadd.f32 %v445_v7, %v411_v19 }
 0x173   :  { %632 = vadd.xlane.f32.xlu1 %v631_v39  ;;  %629 = vadd.xlane.f32.xlu0 %v1466_v62 }
 0x174   :  { %v472_v54 = vpop.xlane.xlu1 %471  ;;  %v510_v55 = vpop.xlane.xlu0 %509 }
 0x175   :  { %v483_v41 = vsel %vm482_vm7, %v472_v54, 0.0  ;;  %v521_v57 = vsel %vm520_vm8, %v510_v55, 0.0 }
 0x176   :  { %v487_v15 = vadd.f32 %v483_v41, %v449_v40 }
 0x177   :  { %924 = vadd.xlane.f32.xlu0 %v1474_v38 }
 0x178   :  { %v525_v62 = vadd.f32 %v521_v57, %v487_v15  ;;  %v667_v42 = vpop.xlane.xlu1 %666  ;;  %v835_v59 = vpop.xlane.xlu0 %834 }
 0x179   :  { %v677_v9 = vsel %vm292_vm3, %v667_v42, 0.0  ;;  %v845_v22 = vsel %vm520_vm8, %v835_v59, 0.0 }
 0x17b   :  { %927 = vadd.xlane.f32.xlu0 %v926_v56 }
 0x17c   :  { %v695_v60 = vpop.xlane.xlu1 %694  ;;  %v323_v3 = vpop.xlane.xlu0 %322 }
 0x17d   :  { %v705_v14 = vsel %vm330_vm2, %v695_v60, 0.0  ;;  %v332_v27 = vsel %vm330_vm2, %v323_v3, 0.0 }
 0x17e   :  { %v709_v16 = vadd.f32 %v705_v14, %v677_v9 }
 0x180   :  { %v723_v61 = vpop.xlane.xlu1 %722  ;;  %v361_v63 = vpop.xlane.xlu0 %360 }
 0x181   :  { %v733_v2 = vsel %vm368_vm4, %v723_v61, 0.0  ;;  %v370_v40 = vsel %vm368_vm4, %v361_v63, 0.0 }
 0x182   :  { %v737_v38 = vadd.f32 %v733_v2, %v709_v16 }
 0x184   :  { %v765_v5 = vadd.f32 %v761_v1, %v737_v38  ;;  %v548_v6 = vpop.xlane.xlu1 %547  ;;  %v399_v50 = vpop.xlane.xlu0 %398 }
 0x185   :  { %v559_v12 = vsel %vm558_vm9, %v548_v6, 0.0  ;;  %v408_v51 = vsel %vm406_vm5, %v399_v50, 0.0 }
 0x186   :  { %v793_v52 = vadd.f32 %v789_v11, %v765_v5  ;;  %v563_v17 = vadd.f32 %v559_v12, %v525_v62 }
 0x188   :  { %v863_v58 = vpop.xlane.xlu1 %862  ;;  %v821_v20 = vadd.f32 %v817_v18, %v793_v52  ;;  %v437_v21 = vpop.xlane.xlu0 %436 }
 0x189   :  { %v873_v28 = vsel %vm558_vm9, %v863_v58, 0.0  ;;  %v446_v62 = vsel %vm444_vm6, %v437_v21, 0.0 }
 0x18a   :  { %v849_v23 = vadd.f32 %v845_v22, %v821_v20 }
 0x18c   :  { %v877_v8 = vadd.f32 %v873_v28, %v849_v23  ;;  %v586_v13 = vpop.xlane.xlu1 %585  ;;  %v475_v24 = vpop.xlane.xlu0 %474 }
 0x18d   :  { %v597_v25 = vsel %vm596_vm10, %v586_v13, 0.0  ;;  %v484_v60 = vsel %vm482_vm7, %v475_v24, 0.0 }
 0x18e   :  { %v601_v29 = vadd.f32 %v597_v25, %v563_v17 }
 0x190   :  { %v891_v31 = vpop.xlane.xlu1 %890  ;;  %v670_v4 = vpop.xlane.xlu0 %669 }
 0x191   :  { %v901_v36 = vsel %vm596_vm10, %v891_v31, 0.0  ;;  %v678_v33 = vsel %vm292_vm3, %v670_v4, 0.0 }
 0x192   :  { %v905_v43 = vadd.f32 %v901_v36, %v877_v8 }
 0x194   :  { %v624_v44 = vpop.xlane.xlu1 %623  ;;  %v698_v37 = vpop.xlane.xlu0 %697 }
 0x195   :  { %v635_v45 = vsel %vm634_vm11, %v624_v44, 0.0  ;;  %v706_v46 = vsel %vm330_vm2, %v698_v37, 0.0 }
 0x196   :  { %v639_v48 = vadd.f32 %v635_v45, %v601_v29  ;;  %v710_v10 = vadd.f32 %v706_v46, %v678_v33 }
 0x198   :  { %v919_v49 = vpop.xlane.xlu1 %918  ;;  %v726_v35 = vpop.xlane.xlu0 %725  ;;  %v644_v25 = vsel %vm643_vm12, %v639_v48, 0.0 }
 0x199   :  { %v929_v26 = vsel %vm634_vm11, %v919_v49, 0.0  ;;  %v734_v32 = vsel %vm368_vm4, %v726_v35, 0.0 }
 0x19a   :  { %v933_v30 = vadd.f32 %v929_v26, %v905_v43  ;;  %v738_v34 = vadd.f32 %v734_v32, %v710_v10 }
 0x19c   :  { %v285_v19 = vpop.xlane.xlu1 %284  ;;  %v551_v47 = vpop.xlane.xlu0 %550  ;;  %v937_v33 = vsel %vm643_vm12, %v933_v30, 0.0 }
 0x19d   :  { %v294_v7 = vsel %vm292_vm3, %v285_v19, 0.0  ;;  %v560_v50 = vsel %vm558_vm9, %v551_v47, 0.0 }
 0x19e   :  { %v336_v39 = vadd.f32 %v332_v27, %v294_v7 }
 0x1a0   :  { %v374_v54 = vadd.f32 %v370_v40, %v336_v39  ;;  %v754_v55 = vpop.xlane.xlu1 %753  ;;  %v866_v41 = vpop.xlane.xlu0 %865 }
 0x1a1   :  { %v762_v53 = vsel %vm406_vm5, %v754_v55, 0.0  ;;  %v874_v21 = vsel %vm558_vm9, %v866_v41, 0.0 }
 0x1a2   :  { %v412_v15 = vadd.f32 %v408_v51, %v374_v54  ;;  %v766_v57 = vadd.f32 %v762_v53, %v738_v34 }
 0x1a4   :  { %v782_v42 = vpop.xlane.xlu1 %781  ;;  %v589_v59 = vpop.xlane.xlu0 %588  ;;  %v450_v56 = vadd.f32 %v446_v62, %v412_v15 }
 0x1a5   :  { %v790_v3 = vsel %vm444_vm6, %v782_v42, 0.0  ;;  %v598_v17 = vsel %vm596_vm10, %v589_v59, 0.0 }
 0x1a6   :  { %v794_v9 = vadd.f32 %v790_v3, %v766_v57  ;;  %v488_v14 = vadd.f32 %v484_v60, %v450_v56 }
 0x1a8   :  { %v810_v16 = vpop.xlane.xlu1 %809  ;;  %v894_v61 = vpop.xlane.xlu0 %893 }
 0x1a9   :  { %v818_v63 = vsel %vm482_vm7, %v810_v16, 0.0  ;;  %v902_v24 = vsel %vm596_vm10, %v894_v61, 0.0 }
 0x1aa   :  { %v822_v2 = vadd.f32 %v818_v63, %v794_v9 }
 0x1ac   :  { %v513_v38 = vpop.xlane.xlu1 %512  ;;  %v627_v1 = vpop.xlane.xlu0 %626 }
 0x1ad   :  { %v522_v5 = vsel %vm520_vm8, %v513_v38, 0.0  ;;  %v636_v22 = vsel %vm634_vm11, %v627_v1, 0.0 }
 0x1ae   :  { %v526_v6 = vadd.f32 %v522_v5, %v488_v14 }
 0x1b0   :  { %v564_v11 = vadd.f32 %v560_v50, %v526_v6  ;;  %v838_v12 = vpop.xlane.xlu1 %837  ;;  %v922_v52 = vpop.xlane.xlu0 %921 }
 0x1b1   :  { %v846_v18 = vsel %vm520_vm8, %v838_v12, 0.0  ;;  %v930_v36 = vsel %vm634_vm11, %v922_v52, 0.0 }
 0x1b2   :  { %v602_v58 = vadd.f32 %v598_v17, %v564_v11  ;;  %v850_v20 = vadd.f32 %v846_v18, %v822_v2 }
 0x1b4   :  { %v640_v23 = vadd.f32 %v636_v22, %v602_v58  ;;  %v878_v28 = vadd.f32 %v874_v21, %v850_v20  ;;  %v326_v8 = vpop.xlane.xlu1 %325  ;;  %v288_v13 = vpop.xlane.xlu0 %287 }
 0x1b5   :  { %v333_v42 = vsel %vm330_vm2, %v326_v8, 0.0  ;;  %v295_v59 = vsel %vm292_vm3, %v288_v13, 0.0 }
 0x1b6   :  { %v645_v29 = vsel %vm643_vm12, %v640_v23, 0.0  ;;  %v906_v31 = vadd.f32 %v902_v24, %v878_v28  ;;  %v337_v63 = vadd.f32 %v333_v42, %v295_v59 }
 0x1b7   :  { %v1833_v4 = vadd.f32 %v645_v29, %v644_v25 }
 0x1b8   :  { %v934_v43 = vadd.f32 %v930_v36, %v906_v31  ;;  %v364_v44 = vpop.xlane.xlu1 %363  ;;  %v701_v37 = vpop.xlane.xlu0 %700 }
 0x1b9   :  { %v371_v9 = vsel %vm368_vm4, %v364_v44, 0.0  ;;  %v707_v38 = vsel %vm330_vm2, %v701_v37, 0.0 }
 0x1ba   :  { %v938_v45 = vsel %vm643_vm12, %v934_v43, 0.0  ;;  %v375_v50 = vadd.f32 %v371_v9, %v337_v63 }
 0x1bb   :  { %v1839_v46 = vadd.f32 %v938_v45, %v937_v33 }
 0x1bc   :  { %v402_v10 = vpop.xlane.xlu1 %401  ;;  %v1841_v49 = vpop.xlane.xlu0 %515 }
 0x1bd   :  { %v409_v1 = vsel %vm406_vm5, %v402_v10, 0.0 }
 0x1be   :  { %v413_v21 = vadd.f32 %v409_v1, %v375_v50 }
 0x1c0   :  { %v440_v48 = vpop.xlane.xlu1 %439  ;;  %v1843_v35 = vpop.xlane.xlu0 %840 }
 0x1c1   :  { %v447_v18 = vsel %vm444_vm6, %v440_v48, 0.0 }
 0x1c2   :  { %v451_v24 = vadd.f32 %v447_v18, %v413_v21 }
 0x1c4   :  { %v478_v26 = vpop.xlane.xlu1 %477  ;;  %v1845_v32 = vpop.xlane.xlu0 %553 }
 0x1c5   :  { %v485_v28 = vsel %vm482_vm7, %v478_v26, 0.0 }
 0x1c6   :  { %v489_v37 = vadd.f32 %v485_v28, %v451_v24 }
 0x1c8   :  { %v673_v34 = vpop.xlane.xlu1 %672  ;;  %v1847_v19 = vpop.xlane.xlu0 %868 }
 0x1c9   :  { %v679_v14 = vsel %vm292_vm3, %v673_v34, 0.0  ;;  %v875_v63 = vsel %vm558_vm9, %v1847_v19, 0.0 }
 0x1ca   :  { %v711_v11 = vadd.f32 %v707_v38, %v679_v14 }
 0x1cc   :  { %v729_v47 = vpop.xlane.xlu1 %728  ;;  %v1849_v27 = vpop.xlane.xlu0 %591 }
 0x1cd   :  { %v735_v5 = vsel %vm368_vm4, %v729_v47, 0.0 }
 0x1ce   :  { %v739_v22 = vadd.f32 %v735_v5, %v711_v11 }
 0x1d0   :  { %v757_v30 = vpop.xlane.xlu1 %756  ;;  %v1851_v7 = vpop.xlane.xlu0 %896 }
 0x1d1   :  { %v763_v58 = vsel %vm406_vm5, %v757_v30, 0.0 }
 0x1d2   :  { %v767_v25 = vadd.f32 %v763_v58, %v739_v22 }
 0x1d4   :  { %v785_v39 = vpop.xlane.xlu1 %784  ;;  %v291_v40 = vpop.xlane.xlu0 %290 }
 0x1d5   :  { %v296_v16 = vsel %vm292_vm3, %v291_v40, 0.0  ;;  %v791_v8 = vsel %vm444_vm6, %v785_v39, 0.0  ;;  %v523_v39 = vsel %vm520_vm8, %v1841_v49, 0.0 }
 0x1d6   :  { %v795_v33 = vadd.f32 %v791_v8, %v767_v25 }
 0x1d8   :  { %v813_v54 = vpop.xlane.xlu1 %812  ;;  %v329_v55 = vpop.xlane.xlu0 %328 }
 0x1d9   :  { %v334_v56 = vsel %vm330_vm2, %v329_v55, 0.0  ;;  %v819_v43 = vsel %vm482_vm7, %v813_v54, 0.0  ;;  %v527_v55 = vadd.f32 %v523_v39, %v489_v37 }
 0x1da   :  { %v338_v2 = vadd.f32 %v334_v56, %v296_v16  ;;  %v823_v26 = vadd.f32 %v819_v43, %v795_v33 }
 0x1dc   :  { %v676_v41 = vpop.xlane.xlu1 %675  ;;  %v367_v51 = vpop.xlane.xlu0 %366 }
 0x1dd   :  { %v372_v61 = vsel %vm368_vm4, %v367_v51, 0.0  ;;  %v680_v10 = vsel %vm292_vm3, %v676_v41, 0.0 }
 0x1de   :  { %v376_v12 = vadd.f32 %v372_v61, %v338_v2 }
 0x1e0   :  { %v1853_v53 = vpop.xlane.xlu1 %815  ;;  %v405_v15 = vpop.xlane.xlu0 %404 }
 0x1e1   :  { %v410_v6 = vsel %vm406_vm5, %v405_v15, 0.0  ;;  %v847_v15 = vsel %vm520_vm8, %v1843_v35, 0.0 }
 0x1e2   :  { %v414_v23 = vadd.f32 %v410_v6, %v376_v12  ;;  %v851_v42 = vadd.f32 %v847_v15, %v823_v26 }
 0x1e4   :  { %v519_v57 = vpop.xlane.xlu1 %518  ;;  %v443_v62 = vpop.xlane.xlu0 %442  ;;  %v879_v6 = vadd.f32 %v875_v63, %v851_v42 }
 0x1e5   :  { %v448_v20 = vsel %vm444_vm6, %v443_v62, 0.0  ;;  %v524_v40 = vsel %vm520_vm8, %v519_v57, 0.0  ;;  %v561_v57 = vsel %vm558_vm9, %v1845_v32, 0.0  ;;  %v820_v32 = vsel %vm482_vm7, %v1853_v53, 0.0 }
 0x1e6   :  { %v452_v29 = vadd.f32 %v448_v20, %v414_v23  ;;  %v565_v14 = vadd.f32 %v561_v57, %v527_v55  ;;  %v903_v53 = vsel %vm596_vm10, %v1851_v7, 0.0 }
 0x1e7   :  { %v907_v20 = vadd.f32 %v903_v53, %v879_v6 }
 0x1e8   :  { %v1861_v60 = vpop.xlane.xlu1 %843  ;;  %v481_v3 = vpop.xlane.xlu0 %480 }
 0x1e9   :  { %v486_v13 = vsel %vm482_vm7, %v481_v3, 0.0  ;;  %v599_v3 = vsel %vm596_vm10, %v1849_v27, 0.0  ;;  %v848_v50 = vsel %vm520_vm8, %v1861_v60, 0.0 }
 0x1ea   :  { %v490_v45 = vadd.f32 %v486_v13, %v452_v29  ;;  %v603_v2 = vadd.f32 %v599_v3, %v565_v14 }
 0x1ec   :  { %v557_v52 = vpop.xlane.xlu1 %556  ;;  %v704_v17 = vpop.xlane.xlu0 %703  ;;  %v528_v51 = vadd.f32 %v524_v40, %v490_v45 }
 0x1ed   :  { %v708_v44 = vsel %vm330_vm2, %v704_v17, 0.0  ;;  %v562_v62 = vsel %vm558_vm9, %v557_v52, 0.0 }
 0x1ee   :  { %v712_v34 = vadd.f32 %v708_v44, %v680_v10  ;;  %v566_v16 = vadd.f32 %v562_v62, %v528_v51 }
 0x1f0   :  { %v872_v31 = vpop.xlane.xlu1 %871  ;;  %v732_v36 = vpop.xlane.xlu0 %731 }
 0x1f1   :  { %v736_v48 = vsel %vm368_vm4, %v732_v36, 0.0  ;;  %v876_v18 = vsel %vm558_vm9, %v872_v31, 0.0 }
 0x1f2   :  { %v740_v41 = vadd.f32 %v736_v48, %v712_v34 }
 0x1f4   :  { %v595_v47 = vpop.xlane.xlu1 %594  ;;  %v760_v30 = vpop.xlane.xlu0 %759 }
 0x1f5   :  { %v764_v54 = vsel %vm406_vm5, %v760_v30, 0.0  ;;  %v600_v9 = vsel %vm596_vm10, %v595_v47, 0.0 }
 0x1f6   :  { %v768_v59 = vadd.f32 %v764_v54, %v740_v41  ;;  %v604_v38 = vadd.f32 %v600_v9, %v566_v16 }
 0x1f8   :  { %v900_v56 = vpop.xlane.xlu1 %899  ;;  %v788_v49 = vpop.xlane.xlu0 %787 }
 0x1f9   :  { %v792_v35 = vsel %vm444_vm6, %v788_v49, 0.0  ;;  %v904_v13 = vsel %vm596_vm10, %v900_v56, 0.0 }
 0x1fa   :  { %v796_v61 = vadd.f32 %v792_v35, %v768_v59 }
 0x1fc   :  { %v824_v27 = vadd.f32 %v820_v32, %v796_v61  ;;  %v633_v1 = vpop.xlane.xlu1 %632  ;;  %v630_v5 = vpop.xlane.xlu0 %629 }
 0x1fd   :  { %v638_v11 = vsel %vm634_vm11, %v633_v1, 0.0  ;;  %v637_v19 = vsel %vm634_vm11, %v630_v5, 0.0 }
 0x1fe   :  { %v852_v12 = vadd.f32 %v848_v50, %v824_v27  ;;  %v642_v52 = vadd.f32 %v638_v11, %v604_v38  ;;  %v641_v17 = vadd.f32 %v637_v19, %v603_v2 }
 0x200   :  { %v647_v58 = vsel %vm643_vm12, %v641_v17, 0.0  ;;  %v925_v60 = vpop.xlane.xlu0 %924  ;;  %v880_v21 = vadd.f32 %v876_v18, %v852_v12  ;;  %v649_v28 = vsel %vm643_vm12, %v642_v52, 0.0 }
 0x201   :  { %v648_v22 = vadd.f32 %v647_v58, %v1833_v4  ;;  %v931_v23 = vsel %vm634_vm11, %v925_v60, 0.0 }
 0x202   :  { %v935_v8 = vadd.f32 %v931_v23, %v907_v20  ;;  %v908_v25 = vadd.f32 %v904_v13, %v880_v21 }
 0x203   :  { %v650_v7 = vadd.f32 %v649_v28, %v648_v22 }
 0x204   :  { %v940_v24 = vsel %vm643_vm12, %v935_v8, 0.0  ;;  %v928_v29 = vpop.xlane.xlu0 %927 }
 0x205   :  { %v651_v31 = vrot.slane %v650_v7, 4  ;;  %v932_v36 = vsel %vm634_vm11, %v928_v29, 0.0  ;;  %v941_v44 = vadd.f32 %v940_v24, %v1839_v46 }
 0x206   :  { %v936_v43 = vadd.f32 %v932_v36, %v908_v25 }
 0x207   :  { %v652_v4 = vadd.f32 %v651_v31, %v650_v7 }
 0x208   :  { %v942_v37 = vsel %vm643_vm12, %v936_v43, 0.0 }
 0x209   :  { %v653_v33 = vrot.slane %v652_v4, 2  ;;  %v943_v45 = vadd.f32 %v942_v37, %v941_v44 }
 0x20b   :  { %v944_v10 = vrot.slane %v943_v45, 4  ;;  %v654_v48 = vadd.f32 %v653_v33, %v652_v4 }
 0x20d   :  { %v945_v26 = vadd.f32 %v944_v10, %v943_v45  ;;  %v655_v30 = vrot.slane %v654_v48, 1 }
 0x20f   :  { %v946_v34 = vrot.slane %v945_v26, 2  ;;  %v656_v40 = vadd.f32 %v655_v30, %v654_v48 }
 0x211   :  { %v947_v47 = vadd.f32 %v946_v34, %v945_v26 }
 0x213   :  { %v948_v39 = vrot.slane %v947_v47, 1 }
 0x215   :  { %v949_v54 = vadd.f32 %v948_v39, %v947_v47 }
 0x217   :  { %v951_v46 = vsel %vm950_vm13, %v656_v40, %v949_v54 }
 0x218   :  { %v959_v55 = vadd.f32 %v1068_v0, %v951_v46 }
 0x21a   :  { %961 = vst.msk [vmem:[#allocation2] sm:$0x3] %vm960_vm14, %v959_v55 }
 0x21b   :  { %1102 = shalt.err (!%p1099_p4)
}
 0x21c   :  { %971 = dma.vmem_to_hbm [thread:$0]  %s969_s19, 32, %s1962_s5, [#allocation3]  }
 0x21d   :  { %1111 = dma.done.wait [#allocation3], 32  }
 0x21e   :  { %1112 = vsyncadd [#allocation3], 4294967264 }
 0x21f   :  { %975 = vsyncpa [#allocation3], 1 }

</bundles_post_ra>
